<compile_context>
chip_gen: v6e
topology: v6e:2x2x1
jax: 0.10.0
libtpu: 0.0.40
codegen_flags: <defaults>
</compile_context>

<pallas_src>
import functools

import jax
import jax.numpy as jnp
from jax.experimental import pallas as pl
from jax.experimental.pallas import tpu as pltpu


def _round_up(x, m):
    return ((x + m - 1) // m) * m


def _glove_loss_kernel(i_ref, j_ref,        # scalar prefetch (SMEM), int32 (B_pad,)
                       scal_ref,            # (TB, 8) f32: [b_i+b_j-log x, wgt*mask, 0..]
                       w_hbm, wt_hbm,       # (V, D) embedding tables, left in HBM
                       out_ref,             # (1, 8, 128) f32 per-core partial sum
                       wi_buf, wj_buf,      # (2*TB, D) VMEM double buffers
                       sem,                 # DMA semaphores, shape (2 slots, 2 tables)
                       *, TB):
    c = pl.program_id(0)                    # core-split index ("parallel" axis)
    n = pl.program_id(1)                    # batch-tile index within this split
    nt = pl.num_programs(1)
    t = c * nt + n                          # global batch-tile index
    slot = n % 2

    UNROLL = 8                              # TB is always a multiple of 8

    def start_gather(tile, slot_):
        """Issue all 2*TB row-gather DMAs of one batch tile (non-blocking)."""
        base = tile * TB
        dst0 = pl.multiple_of(slot_ * TB, TB)

        @pl.loop(0, TB // UNROLL)
        def _(chunk):
            r0 = pl.multiple_of(chunk * UNROLL, UNROLL)
            for u in range(UNROLL):         # static unroll: co-issue loads/pushes
                r = r0 + u
                dst = dst0 + r
                pltpu.make_async_copy(
                    w_hbm.at[pl.ds(i_ref[base + r], 1), :],
                    wi_buf.at[pl.ds(dst, 1), :],
                    sem.at[slot_, 0]).start()
                pltpu.make_async_copy(
                    wt_hbm.at[pl.ds(j_ref[base + r], 1), :],
                    wj_buf.at[pl.ds(dst, 1), :],
                    sem.at[slot_, 1]).start()

    def wait_gather(slot_):
        """One aggregate wait per table: the TB row copies all signal the same
        semaphore, so one descriptor covering TB*D*itemsize bytes is equivalent
        to TB per-row waits (and needs no SMEM index re-reads)."""
        off = pl.multiple_of(slot_ * TB, TB)
        pltpu.make_async_copy(wi_buf.at[pl.ds(off, TB), :],
                              wi_buf.at[pl.ds(off, TB), :],
                              sem.at[slot_, 0]).wait()
        pltpu.make_async_copy(wj_buf.at[pl.ds(off, TB), :],
                              wj_buf.at[pl.ds(off, TB), :],
                              sem.at[slot_, 1]).wait()

    # First tile of this core's range: zero the resident output block and
    # kick off its own gather.
    @pl.when(n == 0)
    def _():
        out_ref[...] = jnp.zeros_like(out_ref)
        start_gather(t, 0)

    # Prefetch the NEXT tile before blocking on the current one so the DMA
    # engine stays busy during the wait (perf-review ordering fix).
    @pl.when(n + 1 < nt)
    def _():
        start_gather(t + 1, 1 - slot)

    wait_gather(slot)

    off = pl.multiple_of(slot * TB, TB)
    wi = wi_buf[pl.ds(off, TB), :].astype(jnp.float32)    # (TB, D)
    wj = wj_buf[pl.ds(off, TB), :].astype(jnp.float32)    # (TB, D)
    csum = scal_ref[:, 0:1]      # b_i + b_j - log(x)   (precomputed; 0 on padded rows)
    wm = scal_ref[:, 1:2]        # mask * clip((x/x_max)^alpha, 0, 1) (0 on padded rows)

    err = jnp.sum(wi * wj, axis=1, keepdims=True) + csum  # (TB, 1)
    # Scalar per-tile partial sum, broadcast over the resident (1,8,128) out
    # block (full unmasked store); wrapper reads element [c, 0, 0].
    out_ref[...] += jnp.sum(wm * err * err, keepdims=True)[None]


def glove_loss_pallas(i_idx, j_idx, scal, weight, weight_tilde, *,
                      TB, NSPLIT, vmem_limit_bytes):
    """i_idx/j_idx: (B_pad,) int32; scal: (B_pad, 8) f32; tables: (V, D)."""
    B_pad = scal.shape[0]
    _, D = weight.shape
    tiles_per_core = (B_pad // TB) // NSPLIT

    kernel = functools.partial(_glove_loss_kernel, TB=TB)

    partials = pl.pallas_call(
        kernel,
        out_shape=jax.ShapeDtypeStruct((NSPLIT, 8, 128), jnp.float32),
        grid_spec=pltpu.PrefetchScalarGridSpec(
            num_scalar_prefetch=2,
            grid=(NSPLIT, tiles_per_core),
            in_specs=[
                pl.BlockSpec((TB, 8),
                             lambda c, n, i_r, j_r: (c * tiles_per_core + n, 0)),
                pl.BlockSpec(memory_space=pl.ANY),   # weight stays in HBM
                pl.BlockSpec(memory_space=pl.ANY),   # weight_tilde stays in HBM
            ],
            out_specs=pl.BlockSpec((1, 8, 128),
                                   lambda c, n, i_r, j_r: (c, 0, 0)),
            scratch_shapes=[
                pltpu.VMEM((2 * TB, D), weight.dtype),   # gathered w_i rows (2 slots)
                pltpu.VMEM((2 * TB, D), weight.dtype),   # gathered w_j rows (2 slots)
                pltpu.SemaphoreType.DMA((2, 2)),         # per (slot, table)
            ],
        ),
        compiler_params=pltpu.CompilerParams(
            dimension_semantics=("parallel", "arbitrary"),
            vmem_limit_bytes=int(vmem_limit_bytes)),
    )(i_idx, j_idx, scal, weight, weight_tilde)
    # Per-core weighted sums live at [:, 0, 0] (every element of a block holds it).
    return jnp.sum(partials[:, 0, 0])


def glove_forward(params, i, j, x, *, x_max, alpha, max_tile=2048,
                  embed_dtype=jnp.float32):
    """Full GloVe forward.  Cheap per-row scalars (biases, log(x), weighting,
    padding mask) are computed and packed in glue XLA; the embedding-row
    gather, dot product and weighted-square accumulation are fused in Pallas.
    Set embed_dtype=jnp.bfloat16 to halve gather HBM traffic (small precision
    cost); default float32 preserves the module's numerics."""
    weight, weight_tilde, bias, bias_tilde = params
    B = int(i.shape[0])
    _, D = weight.shape
    NSPLIT = 2    # split batch tiles across v7x's 2 TensorCores; harmless on 1-TC chips
    itemsize = jnp.dtype(embed_dtype).itemsize

    # Generation-aware tile sizing (v5e/v6e: 128 MiB VMEM, v7x: 64 MiB per TC).
    try:
        vmem_cap = int(pltpu.get_tpu_info().vmem_capacity_bytes)
    except Exception:
        vmem_cap = 64 * 1024 * 1024
    budget = min(vmem_cap // 4, 24 * 1024 * 1024)     # scratch budget for gather bufs
    # Per batch row: 2 tables x 2 slots x D x itemsize gather + lane-padded scal row.
    per_row = 4 * D * itemsize + 2 * 128 * 4
    TB = min(max_tile, max(8, budget // per_row), _round_up(B, 8))
    TB = max(8, (TB // 8) * 8)
    B_pad = _round_up(B, TB * NSPLIT)
    pad = B_pad - B

    scratch_bytes = 2 * (2 * TB * D * itemsize) + 2 * TB * 128 * 4
    vmem_limit = min(max(32 * 1024 * 1024, scratch_bytes + (4 << 20)),
                     (vmem_cap * 9) // 10)

    xf = x.astype(jnp.float32)
    # Precompute per-row scalars outside the kernel (perf review): kernel then
    # does no transcendentals on lane-sparse (TB, 1) operands.
    csum = jnp.take(bias, i) + jnp.take(bias_tilde, j) - jnp.log(xf)
    # TODO(synk): torch.float_power uses float64 internally; we stay in float32.
    wgt = jnp.clip(jnp.power(xf / x_max, alpha), 0.0, 1.0)

    i_p = jnp.pad(i.astype(jnp.int32), (0, pad))
    j_p = jnp.pad(j.astype(jnp.int32), (0, pad))

    scal = jnp.zeros((B_pad, 8), jnp.float32)
    scal = scal.at[:B, 0].set(csum.astype(jnp.float32))
    scal = scal.at[:B, 1].set(wgt.astype(jnp.float32))   # padded rows keep 0 -> masked

    loss_sum = glove_loss_pallas(
        i_p, j_p, scal,
        weight.astype(embed_dtype), weight_tilde.astype(embed_dtype),
        TB=TB, NSPLIT=NSPLIT, vmem_limit_bytes=vmem_limit)
    return loss_sum / B


def glove_forward_ref(params, i, j, x, *, x_max, alpha):
    """Plain-JAX reference mirroring the PyTorch module."""
    weight, weight_tilde, bias, bias_tilde = params
    loss = jnp.sum(weight[i] * weight_tilde[j], axis=1)
    loss = jnp.square(loss + bias[i] + bias_tilde[j] - jnp.log(x))
    wgt = jnp.clip(jnp.power(x / x_max, alpha), 0.0, 1.0)
    return jnp.mean(wgt * loss)


if __name__ == "__main__":
    # Small, deterministic setup consistent with GloVe.__init__ shapes.
    vocab_size = 64
    embedding_size = 32
    x_max = 100.0
    alpha = 0.75
    batch = 20   # deliberately NOT a multiple of the tile -> exercises padding/masking

    key = jax.random.PRNGKey(0)
    k_w, k_wt, k_b, k_bt, k_i, k_j, k_x = jax.random.split(key, 7)

    weight = jax.random.normal(k_w, (vocab_size, embedding_size), jnp.float32)
    weight_tilde = jax.random.normal(k_wt, (vocab_size, embedding_size),
                                     jnp.float32)
    bias = jax.random.normal(k_b, (vocab_size,), jnp.float32)
    bias_tilde = jax.random.normal(k_bt, (vocab_size,), jnp.float32)
    params = (weight, weight_tilde, bias, bias_tilde)

    i = jax.random.randint(k_i, (batch,), 0, vocab_size, jnp.int32)
    j = jax.random.randint(k_j, (batch,), 0, vocab_size, jnp.int32)
    # co-occurrence counts: strictly positive
    x = jax.random.uniform(k_x, (batch,), jnp.float32, 1.0, 150.0)

    # max_tile=8 forces several grid steps per core split (2 splits x 2 tiles)
    # to exercise the double-buffered gather, prefetch-before-wait, aggregate
    # waits, accumulation and masked-padding paths.
    loss = glove_forward(params, i, j, x, x_max=x_max, alpha=alpha, max_tile=8)
    loss = jax.block_until_ready(loss)

    ref = glove_forward_ref(params, i, j, x, x_max=x_max, alpha=alpha)
    assert jnp.allclose(loss, ref, rtol=1e-5, atol=1e-5), (loss, ref)

    print("KERNEL_OK")
</pallas_src>

<mosaic_0001>
module attributes {stable_mosaic.version = 11 : i64} {
  func.func @_glove_loss_kernel(%arg0: i32, %arg1: i32, %arg2: memref<32xi32, #tpu.memory_space<smem>>, %arg3: memref<32xi32, #tpu.memory_space<smem>>, %arg4: memref<8x8xf32, #tpu.memory_space<vmem>>, %arg5: memref<64x32xf32, #tpu.memory_space<any>>, %arg6: memref<64x32xf32, #tpu.memory_space<any>>, %arg7: memref<1x8x128xf32, #tpu.memory_space<vmem>>, %arg8: memref<16x32xf32, #tpu.memory_space<vmem>>, %arg9: memref<16x32xf32, #tpu.memory_space<vmem>>, %arg10: memref<2x2x!tpu.dma_semaphore, #tpu.memory_space<semaphore_mem>>) attributes {dimension_semantics = [#tpu.dimension_semantics<parallel>, #tpu.dimension_semantics<arbitrary>], iteration_bounds = array<i64: 2, 2>, scalar_prefetch = 2 : i64, scratch_operands = 3 : i64, tpu.core_type = #tpu.core_type<tc>, window_params = [{transform_indices = @transform_0, window_bounds = array<i64: 8, 8>}, {}, {}, {transform_indices = @transform_3, window_bounds = array<i64: 1, 8, 128>}]} {
    %c2_i32 = arith.constant 2 : i32
    %0 = arith.muli %arg0, %c2_i32 : i32
    %1 = arith.addi %0, %arg1 : i32
    %c2_i32_0 = arith.constant 2 : i32
    %c0_i32 = arith.constant 0 : i32
    %2 = arith.cmpi eq, %c2_i32_0, %c0_i32 : i32
    %c1_i32 = arith.constant 1 : i32
    %3 = arith.select %2, %c1_i32, %c2_i32_0 : i32
    %4 = arith.remsi %arg1, %3 : i32
    %c0_i32_1 = arith.constant 0 : i32
    %5 = arith.cmpi ne, %4, %c0_i32_1 : i32
    %c0_i32_2 = arith.constant 0 : i32
    %6 = arith.cmpi slt, %4, %c0_i32_2 : i32
    %c0_i32_3 = arith.constant 0 : i32
    %7 = arith.cmpi slt, %3, %c0_i32_3 : i32
    %8 = arith.xori %6, %7 : i1
    %9 = arith.andi %8, %5 : i1
    %10 = arith.addi %4, %3 : i32
    %11 = arith.select %9, %10, %4 : i32
    %c0_i32_4 = arith.constant 0 : i32
    %12 = arith.cmpi eq, %arg1, %c0_i32_4 : i32
    %13 = arith.extui %12 : i1 to i32
    %c0_i32_5 = arith.constant 0 : i32
    %14 = arith.cmpi ne, %13, %c0_i32_5 : i32
    scf.if %14 {
      %cst_27 = arith.constant 0.000000e+00 : f32
      %53 = vector.broadcast %cst_27 : f32 to vector<1x8x128xf32>
      %c0_28 = arith.constant 0 : index
      %c0_29 = arith.constant 0 : index
      %c0_30 = arith.constant 0 : index
      %54 = vector.load %arg7[%c0_28, %c0_29, %c0_30] : memref<1x8x128xf32, #tpu.memory_space<vmem>>, vector<1x8x128xf32>
      tpu.vector_store %arg7[%c0_28, %c0_29, %c0_30], %53 {strides = array<i32>} : memref<1x8x128xf32, #tpu.memory_space<vmem>>, vector<1x8x128xf32>,
      %c8_i32_31 = arith.constant 8 : i32
      %55 = arith.muli %1, %c8_i32_31 : i32
      %c0_i32_32 = arith.constant 0 : i32
      %56 = tpu.assume_multiple %c0_i32_32, 8 : i32
      %c0_i32_33 = arith.constant 0 : i32
      %c1_i32_34 = arith.constant 1 : i32
      %57 = arith.muli %c0_i32_33, %c1_i32_34 : i32
      %c0_i32_35 = arith.constant 0 : i32
      %58 = arith.addi %c0_i32_35, %57 : i32
      %c8_i32_36 = arith.constant 8 : i32
      %59 = arith.muli %58, %c8_i32_36 : i32
      %60 = tpu.assume_multiple %59, 8 : i32
      %c0_i32_37 = arith.constant 0 : i32
      %61 = arith.addi %60, %c0_i32_37 : i32
      %62 = arith.addi %56, %61 : i32
      %63 = arith.addi %55, %61 : i32
      %64 = arith.index_cast %63 : i32 to index
      %65 = memref.load %arg2[%64] : memref<32xi32, #tpu.memory_space<smem>>
      %c0_i32_38 = arith.constant 0 : i32
      %c0_i32_39 = arith.constant 0 : i32
      %c0_i32_40 = arith.constant 0 : i32
      %66 = tpu.memref_slice %arg5[%65, %c0_i32_40] : memref<64x32xf32, #tpu.memory_space<any>> -> memref<1x32xf32, #tpu.memory_space<any>>
      %c0_i32_41 = arith.constant 0 : i32
      %67 = tpu.memref_slice %arg8[%62, %c0_i32_41] : memref<16x32xf32, #tpu.memory_space<vmem>> -> memref<1x32xf32, #tpu.memory_space<vmem>>
      %68 = tpu.memref_slice %arg10[%c0_i32_38, %c0_i32_39] : memref<2x2x!tpu.dma_semaphore, #tpu.memory_space<semaphore_mem>> -> memref<1x1x!tpu.dma_semaphore, #tpu.memory_space<semaphore_mem>>
      %69 = tpu.memref_squeeze %68 : memref<1x1x!tpu.dma_semaphore, #tpu.memory_space<semaphore_mem>> -> memref<!tpu.dma_semaphore, #tpu.memory_space<semaphore_mem>>
      tpu.enqueue_dma source(%66 : memref<1x32xf32, #tpu.memory_space<any>>) target(%67 : memref<1x32xf32, #tpu.memory_space<vmem>>) target_semaphore(%69 : memref<!tpu.dma_semaphore, #tpu.memory_space<semaphore_mem>>)
      %70 = arith.addi %55, %61 : i32
      %71 = arith.index_cast %70 : i32 to index
      %72 = memref.load %arg3[%71] : memref<32xi32, #tpu.memory_space<smem>>
      %c0_i32_42 = arith.constant 0 : i32
      %c1_i32_43 = arith.constant 1 : i32
      %c0_i32_44 = arith.constant 0 : i32
      %73 = tpu.memref_slice %arg6[%72, %c0_i32_44] : memref<64x32xf32, #tpu.memory_space<any>> -> memref<1x32xf32, #tpu.memory_space<any>>
      %c0_i32_45 = arith.constant 0 : i32
      %74 = tpu.memref_slice %arg9[%62, %c0_i32_45] : memref<16x32xf32, #tpu.memory_space<vmem>> -> memref<1x32xf32, #tpu.memory_space<vmem>>
      %75 = tpu.memref_slice %arg10[%c0_i32_42, %c1_i32_43] : memref<2x2x!tpu.dma_semaphore, #tpu.memory_space<semaphore_mem>> -> memref<1x1x!tpu.dma_semaphore, #tpu.memory_space<semaphore_mem>>
      %76 = tpu.memref_squeeze %75 : memref<1x1x!tpu.dma_semaphore, #tpu.memory_space<semaphore_mem>> -> memref<!tpu.dma_semaphore, #tpu.memory_space<semaphore_mem>>
      tpu.enqueue_dma source(%73 : memref<1x32xf32, #tpu.memory_space<any>>) target(%74 : memref<1x32xf32, #tpu.memory_space<vmem>>) target_semaphore(%76 : memref<!tpu.dma_semaphore, #tpu.memory_space<semaphore_mem>>)
      %c1_i32_46 = arith.constant 1 : i32
      %77 = arith.addi %60, %c1_i32_46 : i32
      %78 = arith.addi %56, %77 : i32
      %79 = arith.addi %55, %77 : i32
      %80 = arith.index_cast %79 : i32 to index
      %81 = memref.load %arg2[%80] : memref<32xi32, #tpu.memory_space<smem>>
      %c0_i32_47 = arith.constant 0 : i32
      %c0_i32_48 = arith.constant 0 : i32
      %c0_i32_49 = arith.constant 0 : i32
      %82 = tpu.memref_slice %arg5[%81, %c0_i32_49] : memref<64x32xf32, #tpu.memory_space<any>> -> memref<1x32xf32, #tpu.memory_space<any>>
      %c0_i32_50 = arith.constant 0 : i32
      %83 = tpu.memref_slice %arg8[%78, %c0_i32_50] : memref<16x32xf32, #tpu.memory_space<vmem>> -> memref<1x32xf32, #tpu.memory_space<vmem>>
      %84 = tpu.memref_slice %arg10[%c0_i32_47, %c0_i32_48] : memref<2x2x!tpu.dma_semaphore, #tpu.memory_space<semaphore_mem>> -> memref<1x1x!tpu.dma_semaphore, #tpu.memory_space<semaphore_mem>>
      %85 = tpu.memref_squeeze %84 : memref<1x1x!tpu.dma_semaphore, #tpu.memory_space<semaphore_mem>> -> memref<!tpu.dma_semaphore, #tpu.memory_space<semaphore_mem>>
      tpu.enqueue_dma source(%82 : memref<1x32xf32, #tpu.memory_space<any>>) target(%83 : memref<1x32xf32, #tpu.memory_space<vmem>>) target_semaphore(%85 : memref<!tpu.dma_semaphore, #tpu.memory_space<semaphore_mem>>)
      %86 = arith.addi %55, %77 : i32
      %87 = arith.index_cast %86 : i32 to index
      %88 = memref.load %arg3[%87] : memref<32xi32, #tpu.memory_space<smem>>
      %c0_i32_51 = arith.constant 0 : i32
      %c1_i32_52 = arith.constant 1 : i32
      %c0_i32_53 = arith.constant 0 : i32
      %89 = tpu.memref_slice %arg6[%88, %c0_i32_53] : memref<64x32xf32, #tpu.memory_space<any>> -> memref<1x32xf32, #tpu.memory_space<any>>
      %c0_i32_54 = arith.constant 0 : i32
      %90 = tpu.memref_slice %arg9[%78, %c0_i32_54] : memref<16x32xf32, #tpu.memory_space<vmem>> -> memref<1x32xf32, #tpu.memory_space<vmem>>
      %91 = tpu.memref_slice %arg10[%c0_i32_51, %c1_i32_52] : memref<2x2x!tpu.dma_semaphore, #tpu.memory_space<semaphore_mem>> -> memref<1x1x!tpu.dma_semaphore, #tpu.memory_space<semaphore_mem>>
      %92 = tpu.memref_squeeze %91 : memref<1x1x!tpu.dma_semaphore, #tpu.memory_space<semaphore_mem>> -> memref<!tpu.dma_semaphore, #tpu.memory_space<semaphore_mem>>
      tpu.enqueue_dma source(%89 : memref<1x32xf32, #tpu.memory_space<any>>) target(%90 : memref<1x32xf32, #tpu.memory_space<vmem>>) target_semaphore(%92 : memref<!tpu.dma_semaphore, #tpu.memory_space<semaphore_mem>>)
      %c2_i32_55 = arith.constant 2 : i32
      %93 = arith.addi %60, %c2_i32_55 : i32
      %94 = arith.addi %56, %93 : i32
      %95 = arith.addi %55, %93 : i32
      %96 = arith.index_cast %95 : i32 to index
      %97 = memref.load %arg2[%96] : memref<32xi32, #tpu.memory_space<smem>>
      %c0_i32_56 = arith.constant 0 : i32
      %c0_i32_57 = arith.constant 0 : i32
      %c0_i32_58 = arith.constant 0 : i32
      %98 = tpu.memref_slice %arg5[%97, %c0_i32_58] : memref<64x32xf32, #tpu.memory_space<any>> -> memref<1x32xf32, #tpu.memory_space<any>>
      %c0_i32_59 = arith.constant 0 : i32
      %99 = tpu.memref_slice %arg8[%94, %c0_i32_59] : memref<16x32xf32, #tpu.memory_space<vmem>> -> memref<1x32xf32, #tpu.memory_space<vmem>>
      %100 = tpu.memref_slice %arg10[%c0_i32_56, %c0_i32_57] : memref<2x2x!tpu.dma_semaphore, #tpu.memory_space<semaphore_mem>> -> memref<1x1x!tpu.dma_semaphore, #tpu.memory_space<semaphore_mem>>
      %101 = tpu.memref_squeeze %100 : memref<1x1x!tpu.dma_semaphore, #tpu.memory_space<semaphore_mem>> -> memref<!tpu.dma_semaphore, #tpu.memory_space<semaphore_mem>>
      tpu.enqueue_dma source(%98 : memref<1x32xf32, #tpu.memory_space<any>>) target(%99 : memref<1x32xf32, #tpu.memory_space<vmem>>) target_semaphore(%101 : memref<!tpu.dma_semaphore, #tpu.memory_space<semaphore_mem>>)
      %102 = arith.addi %55, %93 : i32
      %103 = arith.index_cast %102 : i32 to index
      %104 = memref.load %arg3[%103] : memref<32xi32, #tpu.memory_space<smem>>
      %c0_i32_60 = arith.constant 0 : i32
      %c1_i32_61 = arith.constant 1 : i32
      %c0_i32_62 = arith.constant 0 : i32
      %105 = tpu.memref_slice %arg6[%104, %c0_i32_62] : memref<64x32xf32, #tpu.memory_space<any>> -> memref<1x32xf32, #tpu.memory_space<any>>
      %c0_i32_63 = arith.constant 0 : i32
      %106 = tpu.memref_slice %arg9[%94, %c0_i32_63] : memref<16x32xf32, #tpu.memory_space<vmem>> -> memref<1x32xf32, #tpu.memory_space<vmem>>
      %107 = tpu.memref_slice %arg10[%c0_i32_60, %c1_i32_61] : memref<2x2x!tpu.dma_semaphore, #tpu.memory_space<semaphore_mem>> -> memref<1x1x!tpu.dma_semaphore, #tpu.memory_space<semaphore_mem>>
      %108 = tpu.memref_squeeze %107 : memref<1x1x!tpu.dma_semaphore, #tpu.memory_space<semaphore_mem>> -> memref<!tpu.dma_semaphore, #tpu.memory_space<semaphore_mem>>
      tpu.enqueue_dma source(%105 : memref<1x32xf32, #tpu.memory_space<any>>) target(%106 : memref<1x32xf32, #tpu.memory_space<vmem>>) target_semaphore(%108 : memref<!tpu.dma_semaphore, #tpu.memory_space<semaphore_mem>>)
      %c3_i32 = arith.constant 3 : i32
      %109 = arith.addi %60, %c3_i32 : i32
      %110 = arith.addi %56, %109 : i32
      %111 = arith.addi %55, %109 : i32
      %112 = arith.index_cast %111 : i32 to index
      %113 = memref.load %arg2[%112] : memref<32xi32, #tpu.memory_space<smem>>
      %c0_i32_64 = arith.constant 0 : i32
      %c0_i32_65 = arith.constant 0 : i32
      %c0_i32_66 = arith.constant 0 : i32
      %114 = tpu.memref_slice %arg5[%113, %c0_i32_66] : memref<64x32xf32, #tpu.memory_space<any>> -> memref<1x32xf32, #tpu.memory_space<any>>
      %c0_i32_67 = arith.constant 0 : i32
      %115 = tpu.memref_slice %arg8[%110, %c0_i32_67] : memref<16x32xf32, #tpu.memory_space<vmem>> -> memref<1x32xf32, #tpu.memory_space<vmem>>
      %116 = tpu.memref_slice %arg10[%c0_i32_64, %c0_i32_65] : memref<2x2x!tpu.dma_semaphore, #tpu.memory_space<semaphore_mem>> -> memref<1x1x!tpu.dma_semaphore, #tpu.memory_space<semaphore_mem>>
      %117 = tpu.memref_squeeze %116 : memref<1x1x!tpu.dma_semaphore, #tpu.memory_space<semaphore_mem>> -> memref<!tpu.dma_semaphore, #tpu.memory_space<semaphore_mem>>
      tpu.enqueue_dma source(%114 : memref<1x32xf32, #tpu.memory_space<any>>) target(%115 : memref<1x32xf32, #tpu.memory_space<vmem>>) target_semaphore(%117 : memref<!tpu.dma_semaphore, #tpu.memory_space<semaphore_mem>>)
      %118 = arith.addi %55, %109 : i32
      %119 = arith.index_cast %118 : i32 to index
      %120 = memref.load %arg3[%119] : memref<32xi32, #tpu.memory_space<smem>>
      %c0_i32_68 = arith.constant 0 : i32
      %c1_i32_69 = arith.constant 1 : i32
      %c0_i32_70 = arith.constant 0 : i32
      %121 = tpu.memref_slice %arg6[%120, %c0_i32_70] : memref<64x32xf32, #tpu.memory_space<any>> -> memref<1x32xf32, #tpu.memory_space<any>>
      %c0_i32_71 = arith.constant 0 : i32
      %122 = tpu.memref_slice %arg9[%110, %c0_i32_71] : memref<16x32xf32, #tpu.memory_space<vmem>> -> memref<1x32xf32, #tpu.memory_space<vmem>>
      %123 = tpu.memref_slice %arg10[%c0_i32_68, %c1_i32_69] : memref<2x2x!tpu.dma_semaphore, #tpu.memory_space<semaphore_mem>> -> memref<1x1x!tpu.dma_semaphore, #tpu.memory_space<semaphore_mem>>
      %124 = tpu.memref_squeeze %123 : memref<1x1x!tpu.dma_semaphore, #tpu.memory_space<semaphore_mem>> -> memref<!tpu.dma_semaphore, #tpu.memory_space<semaphore_mem>>
      tpu.enqueue_dma source(%121 : memref<1x32xf32, #tpu.memory_space<any>>) target(%122 : memref<1x32xf32, #tpu.memory_space<vmem>>) target_semaphore(%124 : memref<!tpu.dma_semaphore, #tpu.memory_space<semaphore_mem>>)
      %c4_i32 = arith.constant 4 : i32
      %125 = arith.addi %60, %c4_i32 : i32
      %126 = arith.addi %56, %125 : i32
      %127 = arith.addi %55, %125 : i32
      %128 = arith.index_cast %127 : i32 to index
      %129 = memref.load %arg2[%128] : memref<32xi32, #tpu.memory_space<smem>>
      %c0_i32_72 = arith.constant 0 : i32
      %c0_i32_73 = arith.constant 0 : i32
      %c0_i32_74 = arith.constant 0 : i32
      %130 = tpu.memref_slice %arg5[%129, %c0_i32_74] : memref<64x32xf32, #tpu.memory_space<any>> -> memref<1x32xf32, #tpu.memory_space<any>>
      %c0_i32_75 = arith.constant 0 : i32
      %131 = tpu.memref_slice %arg8[%126, %c0_i32_75] : memref<16x32xf32, #tpu.memory_space<vmem>> -> memref<1x32xf32, #tpu.memory_space<vmem>>
      %132 = tpu.memref_slice %arg10[%c0_i32_72, %c0_i32_73] : memref<2x2x!tpu.dma_semaphore, #tpu.memory_space<semaphore_mem>> -> memref<1x1x!tpu.dma_semaphore, #tpu.memory_space<semaphore_mem>>
      %133 = tpu.memref_squeeze %132 : memref<1x1x!tpu.dma_semaphore, #tpu.memory_space<semaphore_mem>> -> memref<!tpu.dma_semaphore, #tpu.memory_space<semaphore_mem>>
      tpu.enqueue_dma source(%130 : memref<1x32xf32, #tpu.memory_space<any>>) target(%131 : memref<1x32xf32, #tpu.memory_space<vmem>>) target_semaphore(%133 : memref<!tpu.dma_semaphore, #tpu.memory_space<semaphore_mem>>)
      %134 = arith.addi %55, %125 : i32
      %135 = arith.index_cast %134 : i32 to index
      %136 = memref.load %arg3[%135] : memref<32xi32, #tpu.memory_space<smem>>
      %c0_i32_76 = arith.constant 0 : i32
      %c1_i32_77 = arith.constant 1 : i32
      %c0_i32_78 = arith.constant 0 : i32
      %137 = tpu.memref_slice %arg6[%136, %c0_i32_78] : memref<64x32xf32, #tpu.memory_space<any>> -> memref<1x32xf32, #tpu.memory_space<any>>
      %c0_i32_79 = arith.constant 0 : i32
      %138 = tpu.memref_slice %arg9[%126, %c0_i32_79] : memref<16x32xf32, #tpu.memory_space<vmem>> -> memref<1x32xf32, #tpu.memory_space<vmem>>
      %139 = tpu.memref_slice %arg10[%c0_i32_76, %c1_i32_77] : memref<2x2x!tpu.dma_semaphore, #tpu.memory_space<semaphore_mem>> -> memref<1x1x!tpu.dma_semaphore, #tpu.memory_space<semaphore_mem>>
      %140 = tpu.memref_squeeze %139 : memref<1x1x!tpu.dma_semaphore, #tpu.memory_space<semaphore_mem>> -> memref<!tpu.dma_semaphore, #tpu.memory_space<semaphore_mem>>
      tpu.enqueue_dma source(%137 : memref<1x32xf32, #tpu.memory_space<any>>) target(%138 : memref<1x32xf32, #tpu.memory_space<vmem>>) target_semaphore(%140 : memref<!tpu.dma_semaphore, #tpu.memory_space<semaphore_mem>>)
      %c5_i32 = arith.constant 5 : i32
      %141 = arith.addi %60, %c5_i32 : i32
      %142 = arith.addi %56, %141 : i32
      %143 = arith.addi %55, %141 : i32
      %144 = arith.index_cast %143 : i32 to index
      %145 = memref.load %arg2[%144] : memref<32xi32, #tpu.memory_space<smem>>
      %c0_i32_80 = arith.constant 0 : i32
      %c0_i32_81 = arith.constant 0 : i32
      %c0_i32_82 = arith.constant 0 : i32
      %146 = tpu.memref_slice %arg5[%145, %c0_i32_82] : memref<64x32xf32, #tpu.memory_space<any>> -> memref<1x32xf32, #tpu.memory_space<any>>
      %c0_i32_83 = arith.constant 0 : i32
      %147 = tpu.memref_slice %arg8[%142, %c0_i32_83] : memref<16x32xf32, #tpu.memory_space<vmem>> -> memref<1x32xf32, #tpu.memory_space<vmem>>
      %148 = tpu.memref_slice %arg10[%c0_i32_80, %c0_i32_81] : memref<2x2x!tpu.dma_semaphore, #tpu.memory_space<semaphore_mem>> -> memref<1x1x!tpu.dma_semaphore, #tpu.memory_space<semaphore_mem>>
      %149 = tpu.memref_squeeze %148 : memref<1x1x!tpu.dma_semaphore, #tpu.memory_space<semaphore_mem>> -> memref<!tpu.dma_semaphore, #tpu.memory_space<semaphore_mem>>
      tpu.enqueue_dma source(%146 : memref<1x32xf32, #tpu.memory_space<any>>) target(%147 : memref<1x32xf32, #tpu.memory_space<vmem>>) target_semaphore(%149 : memref<!tpu.dma_semaphore, #tpu.memory_space<semaphore_mem>>)
      %150 = arith.addi %55, %141 : i32
      %151 = arith.index_cast %150 : i32 to index
      %152 = memref.load %arg3[%151] : memref<32xi32, #tpu.memory_space<smem>>
      %c0_i32_84 = arith.constant 0 : i32
      %c1_i32_85 = arith.constant 1 : i32
      %c0_i32_86 = arith.constant 0 : i32
      %153 = tpu.memref_slice %arg6[%152, %c0_i32_86] : memref<64x32xf32, #tpu.memory_space<any>> -> memref<1x32xf32, #tpu.memory_space<any>>
      %c0_i32_87 = arith.constant 0 : i32
      %154 = tpu.memref_slice %arg9[%142, %c0_i32_87] : memref<16x32xf32, #tpu.memory_space<vmem>> -> memref<1x32xf32, #tpu.memory_space<vmem>>
      %155 = tpu.memref_slice %arg10[%c0_i32_84, %c1_i32_85] : memref<2x2x!tpu.dma_semaphore, #tpu.memory_space<semaphore_mem>> -> memref<1x1x!tpu.dma_semaphore, #tpu.memory_space<semaphore_mem>>
      %156 = tpu.memref_squeeze %155 : memref<1x1x!tpu.dma_semaphore, #tpu.memory_space<semaphore_mem>> -> memref<!tpu.dma_semaphore, #tpu.memory_space<semaphore_mem>>
      tpu.enqueue_dma source(%153 : memref<1x32xf32, #tpu.memory_space<any>>) target(%154 : memref<1x32xf32, #tpu.memory_space<vmem>>) target_semaphore(%156 : memref<!tpu.dma_semaphore, #tpu.memory_space<semaphore_mem>>)
      %c6_i32 = arith.constant 6 : i32
      %157 = arith.addi %60, %c6_i32 : i32
      %158 = arith.addi %56, %157 : i32
      %159 = arith.addi %55, %157 : i32
      %160 = arith.index_cast %159 : i32 to index
      %161 = memref.load %arg2[%160] : memref<32xi32, #tpu.memory_space<smem>>
      %c0_i32_88 = arith.constant 0 : i32
      %c0_i32_89 = arith.constant 0 : i32
      %c0_i32_90 = arith.constant 0 : i32
      %162 = tpu.memref_slice %arg5[%161, %c0_i32_90] : memref<64x32xf32, #tpu.memory_space<any>> -> memref<1x32xf32, #tpu.memory_space<any>>
      %c0_i32_91 = arith.constant 0 : i32
      %163 = tpu.memref_slice %arg8[%158, %c0_i32_91] : memref<16x32xf32, #tpu.memory_space<vmem>> -> memref<1x32xf32, #tpu.memory_space<vmem>>
      %164 = tpu.memref_slice %arg10[%c0_i32_88, %c0_i32_89] : memref<2x2x!tpu.dma_semaphore, #tpu.memory_space<semaphore_mem>> -> memref<1x1x!tpu.dma_semaphore, #tpu.memory_space<semaphore_mem>>
      %165 = tpu.memref_squeeze %164 : memref<1x1x!tpu.dma_semaphore, #tpu.memory_space<semaphore_mem>> -> memref<!tpu.dma_semaphore, #tpu.memory_space<semaphore_mem>>
      tpu.enqueue_dma source(%162 : memref<1x32xf32, #tpu.memory_space<any>>) target(%163 : memref<1x32xf32, #tpu.memory_space<vmem>>) target_semaphore(%165 : memref<!tpu.dma_semaphore, #tpu.memory_space<semaphore_mem>>)
      %166 = arith.addi %55, %157 : i32
      %167 = arith.index_cast %166 : i32 to index
      %168 = memref.load %arg3[%167] : memref<32xi32, #tpu.memory_space<smem>>
      %c0_i32_92 = arith.constant 0 : i32
      %c1_i32_93 = arith.constant 1 : i32
      %c0_i32_94 = arith.constant 0 : i32
      %169 = tpu.memref_slice %arg6[%168, %c0_i32_94] : memref<64x32xf32, #tpu.memory_space<any>> -> memref<1x32xf32, #tpu.memory_space<any>>
      %c0_i32_95 = arith.constant 0 : i32
      %170 = tpu.memref_slice %arg9[%158, %c0_i32_95] : memref<16x32xf32, #tpu.memory_space<vmem>> -> memref<1x32xf32, #tpu.memory_space<vmem>>
      %171 = tpu.memref_slice %arg10[%c0_i32_92, %c1_i32_93] : memref<2x2x!tpu.dma_semaphore, #tpu.memory_space<semaphore_mem>> -> memref<1x1x!tpu.dma_semaphore, #tpu.memory_space<semaphore_mem>>
      %172 = tpu.memref_squeeze %171 : memref<1x1x!tpu.dma_semaphore, #tpu.memory_space<semaphore_mem>> -> memref<!tpu.dma_semaphore, #tpu.memory_space<semaphore_mem>>
      tpu.enqueue_dma source(%169 : memref<1x32xf32, #tpu.memory_space<any>>) target(%170 : memref<1x32xf32, #tpu.memory_space<vmem>>) target_semaphore(%172 : memref<!tpu.dma_semaphore, #tpu.memory_space<semaphore_mem>>)
      %c7_i32 = arith.constant 7 : i32
      %173 = arith.addi %60, %c7_i32 : i32
      %174 = arith.addi %56, %173 : i32
      %175 = arith.addi %55, %173 : i32
      %176 = arith.index_cast %175 : i32 to index
      %177 = memref.load %arg2[%176] : memref<32xi32, #tpu.memory_space<smem>>
      %c0_i32_96 = arith.constant 0 : i32
      %c0_i32_97 = arith.constant 0 : i32
      %c0_i32_98 = arith.constant 0 : i32
      %178 = tpu.memref_slice %arg5[%177, %c0_i32_98] : memref<64x32xf32, #tpu.memory_space<any>> -> memref<1x32xf32, #tpu.memory_space<any>>
      %c0_i32_99 = arith.constant 0 : i32
      %179 = tpu.memref_slice %arg8[%174, %c0_i32_99] : memref<16x32xf32, #tpu.memory_space<vmem>> -> memref<1x32xf32, #tpu.memory_space<vmem>>
      %180 = tpu.memref_slice %arg10[%c0_i32_96, %c0_i32_97] : memref<2x2x!tpu.dma_semaphore, #tpu.memory_space<semaphore_mem>> -> memref<1x1x!tpu.dma_semaphore, #tpu.memory_space<semaphore_mem>>
      %181 = tpu.memref_squeeze %180 : memref<1x1x!tpu.dma_semaphore, #tpu.memory_space<semaphore_mem>> -> memref<!tpu.dma_semaphore, #tpu.memory_space<semaphore_mem>>
      tpu.enqueue_dma source(%178 : memref<1x32xf32, #tpu.memory_space<any>>) target(%179 : memref<1x32xf32, #tpu.memory_space<vmem>>) target_semaphore(%181 : memref<!tpu.dma_semaphore, #tpu.memory_space<semaphore_mem>>)
      %182 = arith.addi %55, %173 : i32
      %183 = arith.index_cast %182 : i32 to index
      %184 = memref.load %arg3[%183] : memref<32xi32, #tpu.memory_space<smem>>
      %c0_i32_100 = arith.constant 0 : i32
      %c1_i32_101 = arith.constant 1 : i32
      %c0_i32_102 = arith.constant 0 : i32
      %185 = tpu.memref_slice %arg6[%184, %c0_i32_102] : memref<64x32xf32, #tpu.memory_space<any>> -> memref<1x32xf32, #tpu.memory_space<any>>
      %c0_i32_103 = arith.constant 0 : i32
      %186 = tpu.memref_slice %arg9[%174, %c0_i32_103] : memref<16x32xf32, #tpu.memory_space<vmem>> -> memref<1x32xf32, #tpu.memory_space<vmem>>
      %187 = tpu.memref_slice %arg10[%c0_i32_100, %c1_i32_101] : memref<2x2x!tpu.dma_semaphore, #tpu.memory_space<semaphore_mem>> -> memref<1x1x!tpu.dma_semaphore, #tpu.memory_space<semaphore_mem>>
      %188 = tpu.memref_squeeze %187 : memref<1x1x!tpu.dma_semaphore, #tpu.memory_space<semaphore_mem>> -> memref<!tpu.dma_semaphore, #tpu.memory_space<semaphore_mem>>
      tpu.enqueue_dma source(%185 : memref<1x32xf32, #tpu.memory_space<any>>) target(%186 : memref<1x32xf32, #tpu.memory_space<vmem>>) target_semaphore(%188 : memref<!tpu.dma_semaphore, #tpu.memory_space<semaphore_mem>>)
      %c1_i32_104 = arith.constant 1 : i32
    } else {
    }
    %c1_i32_6 = arith.constant 1 : i32
    %15 = arith.addi %arg1, %c1_i32_6 : i32
    %c2_i32_7 = arith.constant 2 : i32
    %16 = arith.cmpi slt, %15, %c2_i32_7 : i32
    %17 = arith.extui %16 : i1 to i32
    %c0_i32_8 = arith.constant 0 : i32
    %18 = arith.cmpi ne, %17, %c0_i32_8 : i32
    scf.if %18 {
      %c1_i32_27 = arith.constant 1 : i32
      %53 = arith.addi %1, %c1_i32_27 : i32
      %c1_i32_28 = arith.constant 1 : i32
      %54 = arith.subi %c1_i32_28, %11 : i32
      %c8_i32_29 = arith.constant 8 : i32
      %55 = arith.muli %53, %c8_i32_29 : i32
      %c8_i32_30 = arith.constant 8 : i32
      %56 = arith.muli %54, %c8_i32_30 : i32
      %57 = tpu.assume_multiple %56, 8 : i32
      %c0_i32_31 = arith.constant 0 : i32
      %c1_i32_32 = arith.constant 1 : i32
      %58 = arith.muli %c0_i32_31, %c1_i32_32 : i32
      %c0_i32_33 = arith.constant 0 : i32
      %59 = arith.addi %c0_i32_33, %58 : i32
      %c8_i32_34 = arith.constant 8 : i32
      %60 = arith.muli %59, %c8_i32_34 : i32
      %61 = tpu.assume_multiple %60, 8 : i32
      %c0_i32_35 = arith.constant 0 : i32
      %62 = arith.addi %61, %c0_i32_35 : i32
      %63 = arith.addi %57, %62 : i32
      %64 = arith.addi %55, %62 : i32
      %65 = arith.index_cast %64 : i32 to index
      %66 = memref.load %arg2[%65] : memref<32xi32, #tpu.memory_space<smem>>
      %c0_i32_36 = arith.constant 0 : i32
      %c0_i32_37 = arith.constant 0 : i32
      %67 = tpu.memref_slice %arg5[%66, %c0_i32_37] : memref<64x32xf32, #tpu.memory_space<any>> -> memref<1x32xf32, #tpu.memory_space<any>>
      %c0_i32_38 = arith.constant 0 : i32
      %68 = tpu.memref_slice %arg8[%63, %c0_i32_38] : memref<16x32xf32, #tpu.memory_space<vmem>> -> memref<1x32xf32, #tpu.memory_space<vmem>>
      %69 = tpu.memref_slice %arg10[%54, %c0_i32_36] : memref<2x2x!tpu.dma_semaphore, #tpu.memory_space<semaphore_mem>> -> memref<1x1x!tpu.dma_semaphore, #tpu.memory_space<semaphore_mem>>
      %70 = tpu.memref_squeeze %69 : memref<1x1x!tpu.dma_semaphore, #tpu.memory_space<semaphore_mem>> -> memref<!tpu.dma_semaphore, #tpu.memory_space<semaphore_mem>>
      tpu.enqueue_dma source(%67 : memref<1x32xf32, #tpu.memory_space<any>>) target(%68 : memref<1x32xf32, #tpu.memory_space<vmem>>) target_semaphore(%70 : memref<!tpu.dma_semaphore, #tpu.memory_space<semaphore_mem>>)
      %71 = arith.addi %55, %62 : i32
      %72 = arith.index_cast %71 : i32 to index
      %73 = memref.load %arg3[%72] : memref<32xi32, #tpu.memory_space<smem>>
      %c1_i32_39 = arith.constant 1 : i32
      %c0_i32_40 = arith.constant 0 : i32
      %74 = tpu.memref_slice %arg6[%73, %c0_i32_40] : memref<64x32xf32, #tpu.memory_space<any>> -> memref<1x32xf32, #tpu.memory_space<any>>
      %c0_i32_41 = arith.constant 0 : i32
      %75 = tpu.memref_slice %arg9[%63, %c0_i32_41] : memref<16x32xf32, #tpu.memory_space<vmem>> -> memref<1x32xf32, #tpu.memory_space<vmem>>
      %76 = tpu.memref_slice %arg10[%54, %c1_i32_39] : memref<2x2x!tpu.dma_semaphore, #tpu.memory_space<semaphore_mem>> -> memref<1x1x!tpu.dma_semaphore, #tpu.memory_space<semaphore_mem>>
      %77 = tpu.memref_squeeze %76 : memref<1x1x!tpu.dma_semaphore, #tpu.memory_space<semaphore_mem>> -> memref<!tpu.dma_semaphore, #tpu.memory_space<semaphore_mem>>
      tpu.enqueue_dma source(%74 : memref<1x32xf32, #tpu.memory_space<any>>) target(%75 : memref<1x32xf32, #tpu.memory_space<vmem>>) target_semaphore(%77 : memref<!tpu.dma_semaphore, #tpu.memory_space<semaphore_mem>>)
      %c1_i32_42 = arith.constant 1 : i32
      %78 = arith.addi %61, %c1_i32_42 : i32
      %79 = arith.addi %57, %78 : i32
      %80 = arith.addi %55, %78 : i32
      %81 = arith.index_cast %80 : i32 to index
      %82 = memref.load %arg2[%81] : memref<32xi32, #tpu.memory_space<smem>>
      %c0_i32_43 = arith.constant 0 : i32
      %c0_i32_44 = arith.constant 0 : i32
      %83 = tpu.memref_slice %arg5[%82, %c0_i32_44] : memref<64x32xf32, #tpu.memory_space<any>> -> memref<1x32xf32, #tpu.memory_space<any>>
      %c0_i32_45 = arith.constant 0 : i32
      %84 = tpu.memref_slice %arg8[%79, %c0_i32_45] : memref<16x32xf32, #tpu.memory_space<vmem>> -> memref<1x32xf32, #tpu.memory_space<vmem>>
      %85 = tpu.memref_slice %arg10[%54, %c0_i32_43] : memref<2x2x!tpu.dma_semaphore, #tpu.memory_space<semaphore_mem>> -> memref<1x1x!tpu.dma_semaphore, #tpu.memory_space<semaphore_mem>>
      %86 = tpu.memref_squeeze %85 : memref<1x1x!tpu.dma_semaphore, #tpu.memory_space<semaphore_mem>> -> memref<!tpu.dma_semaphore, #tpu.memory_space<semaphore_mem>>
      tpu.enqueue_dma source(%83 : memref<1x32xf32, #tpu.memory_space<any>>) target(%84 : memref<1x32xf32, #tpu.memory_space<vmem>>) target_semaphore(%86 : memref<!tpu.dma_semaphore, #tpu.memory_space<semaphore_mem>>)
      %87 = arith.addi %55, %78 : i32
      %88 = arith.index_cast %87 : i32 to index
      %89 = memref.load %arg3[%88] : memref<32xi32, #tpu.memory_space<smem>>
      %c1_i32_46 = arith.constant 1 : i32
      %c0_i32_47 = arith.constant 0 : i32
      %90 = tpu.memref_slice %arg6[%89, %c0_i32_47] : memref<64x32xf32, #tpu.memory_space<any>> -> memref<1x32xf32, #tpu.memory_space<any>>
      %c0_i32_48 = arith.constant 0 : i32
      %91 = tpu.memref_slice %arg9[%79, %c0_i32_48] : memref<16x32xf32, #tpu.memory_space<vmem>> -> memref<1x32xf32, #tpu.memory_space<vmem>>
      %92 = tpu.memref_slice %arg10[%54, %c1_i32_46] : memref<2x2x!tpu.dma_semaphore, #tpu.memory_space<semaphore_mem>> -> memref<1x1x!tpu.dma_semaphore, #tpu.memory_space<semaphore_mem>>
      %93 = tpu.memref_squeeze %92 : memref<1x1x!tpu.dma_semaphore, #tpu.memory_space<semaphore_mem>> -> memref<!tpu.dma_semaphore, #tpu.memory_space<semaphore_mem>>
      tpu.enqueue_dma source(%90 : memref<1x32xf32, #tpu.memory_space<any>>) target(%91 : memref<1x32xf32, #tpu.memory_space<vmem>>) target_semaphore(%93 : memref<!tpu.dma_semaphore, #tpu.memory_space<semaphore_mem>>)
      %c2_i32_49 = arith.constant 2 : i32
      %94 = arith.addi %61, %c2_i32_49 : i32
      %95 = arith.addi %57, %94 : i32
      %96 = arith.addi %55, %94 : i32
      %97 = arith.index_cast %96 : i32 to index
      %98 = memref.load %arg2[%97] : memref<32xi32, #tpu.memory_space<smem>>
      %c0_i32_50 = arith.constant 0 : i32
      %c0_i32_51 = arith.constant 0 : i32
      %99 = tpu.memref_slice %arg5[%98, %c0_i32_51] : memref<64x32xf32, #tpu.memory_space<any>> -> memref<1x32xf32, #tpu.memory_space<any>>
      %c0_i32_52 = arith.constant 0 : i32
      %100 = tpu.memref_slice %arg8[%95, %c0_i32_52] : memref<16x32xf32, #tpu.memory_space<vmem>> -> memref<1x32xf32, #tpu.memory_space<vmem>>
      %101 = tpu.memref_slice %arg10[%54, %c0_i32_50] : memref<2x2x!tpu.dma_semaphore, #tpu.memory_space<semaphore_mem>> -> memref<1x1x!tpu.dma_semaphore, #tpu.memory_space<semaphore_mem>>
      %102 = tpu.memref_squeeze %101 : memref<1x1x!tpu.dma_semaphore, #tpu.memory_space<semaphore_mem>> -> memref<!tpu.dma_semaphore, #tpu.memory_space<semaphore_mem>>
      tpu.enqueue_dma source(%99 : memref<1x32xf32, #tpu.memory_space<any>>) target(%100 : memref<1x32xf32, #tpu.memory_space<vmem>>) target_semaphore(%102 : memref<!tpu.dma_semaphore, #tpu.memory_space<semaphore_mem>>)
      %103 = arith.addi %55, %94 : i32
      %104 = arith.index_cast %103 : i32 to index
      %105 = memref.load %arg3[%104] : memref<32xi32, #tpu.memory_space<smem>>
      %c1_i32_53 = arith.constant 1 : i32
      %c0_i32_54 = arith.constant 0 : i32
      %106 = tpu.memref_slice %arg6[%105, %c0_i32_54] : memref<64x32xf32, #tpu.memory_space<any>> -> memref<1x32xf32, #tpu.memory_space<any>>
      %c0_i32_55 = arith.constant 0 : i32
      %107 = tpu.memref_slice %arg9[%95, %c0_i32_55] : memref<16x32xf32, #tpu.memory_space<vmem>> -> memref<1x32xf32, #tpu.memory_space<vmem>>
      %108 = tpu.memref_slice %arg10[%54, %c1_i32_53] : memref<2x2x!tpu.dma_semaphore, #tpu.memory_space<semaphore_mem>> -> memref<1x1x!tpu.dma_semaphore, #tpu.memory_space<semaphore_mem>>
      %109 = tpu.memref_squeeze %108 : memref<1x1x!tpu.dma_semaphore, #tpu.memory_space<semaphore_mem>> -> memref<!tpu.dma_semaphore, #tpu.memory_space<semaphore_mem>>
      tpu.enqueue_dma source(%106 : memref<1x32xf32, #tpu.memory_space<any>>) target(%107 : memref<1x32xf32, #tpu.memory_space<vmem>>) target_semaphore(%109 : memref<!tpu.dma_semaphore, #tpu.memory_space<semaphore_mem>>)
      %c3_i32 = arith.constant 3 : i32
      %110 = arith.addi %61, %c3_i32 : i32
      %111 = arith.addi %57, %110 : i32
      %112 = arith.addi %55, %110 : i32
      %113 = arith.index_cast %112 : i32 to index
      %114 = memref.load %arg2[%113] : memref<32xi32, #tpu.memory_space<smem>>
      %c0_i32_56 = arith.constant 0 : i32
      %c0_i32_57 = arith.constant 0 : i32
      %115 = tpu.memref_slice %arg5[%114, %c0_i32_57] : memref<64x32xf32, #tpu.memory_space<any>> -> memref<1x32xf32, #tpu.memory_space<any>>
      %c0_i32_58 = arith.constant 0 : i32
      %116 = tpu.memref_slice %arg8[%111, %c0_i32_58] : memref<16x32xf32, #tpu.memory_space<vmem>> -> memref<1x32xf32, #tpu.memory_space<vmem>>
      %117 = tpu.memref_slice %arg10[%54, %c0_i32_56] : memref<2x2x!tpu.dma_semaphore, #tpu.memory_space<semaphore_mem>> -> memref<1x1x!tpu.dma_semaphore, #tpu.memory_space<semaphore_mem>>
      %118 = tpu.memref_squeeze %117 : memref<1x1x!tpu.dma_semaphore, #tpu.memory_space<semaphore_mem>> -> memref<!tpu.dma_semaphore, #tpu.memory_space<semaphore_mem>>
      tpu.enqueue_dma source(%115 : memref<1x32xf32, #tpu.memory_space<any>>) target(%116 : memref<1x32xf32, #tpu.memory_space<vmem>>) target_semaphore(%118 : memref<!tpu.dma_semaphore, #tpu.memory_space<semaphore_mem>>)
      %119 = arith.addi %55, %110 : i32
      %120 = arith.index_cast %119 : i32 to index
      %121 = memref.load %arg3[%120] : memref<32xi32, #tpu.memory_space<smem>>
      %c1_i32_59 = arith.constant 1 : i32
      %c0_i32_60 = arith.constant 0 : i32
      %122 = tpu.memref_slice %arg6[%121, %c0_i32_60] : memref<64x32xf32, #tpu.memory_space<any>> -> memref<1x32xf32, #tpu.memory_space<any>>
      %c0_i32_61 = arith.constant 0 : i32
      %123 = tpu.memref_slice %arg9[%111, %c0_i32_61] : memref<16x32xf32, #tpu.memory_space<vmem>> -> memref<1x32xf32, #tpu.memory_space<vmem>>
      %124 = tpu.memref_slice %arg10[%54, %c1_i32_59] : memref<2x2x!tpu.dma_semaphore, #tpu.memory_space<semaphore_mem>> -> memref<1x1x!tpu.dma_semaphore, #tpu.memory_space<semaphore_mem>>
      %125 = tpu.memref_squeeze %124 : memref<1x1x!tpu.dma_semaphore, #tpu.memory_space<semaphore_mem>> -> memref<!tpu.dma_semaphore, #tpu.memory_space<semaphore_mem>>
      tpu.enqueue_dma source(%122 : memref<1x32xf32, #tpu.memory_space<any>>) target(%123 : memref<1x32xf32, #tpu.memory_space<vmem>>) target_semaphore(%125 : memref<!tpu.dma_semaphore, #tpu.memory_space<semaphore_mem>>)
      %c4_i32 = arith.constant 4 : i32
      %126 = arith.addi %61, %c4_i32 : i32
      %127 = arith.addi %57, %126 : i32
      %128 = arith.addi %55, %126 : i32
      %129 = arith.index_cast %128 : i32 to index
      %130 = memref.load %arg2[%129] : memref<32xi32, #tpu.memory_space<smem>>
      %c0_i32_62 = arith.constant 0 : i32
      %c0_i32_63 = arith.constant 0 : i32
      %131 = tpu.memref_slice %arg5[%130, %c0_i32_63] : memref<64x32xf32, #tpu.memory_space<any>> -> memref<1x32xf32, #tpu.memory_space<any>>
      %c0_i32_64 = arith.constant 0 : i32
      %132 = tpu.memref_slice %arg8[%127, %c0_i32_64] : memref<16x32xf32, #tpu.memory_space<vmem>> -> memref<1x32xf32, #tpu.memory_space<vmem>>
      %133 = tpu.memref_slice %arg10[%54, %c0_i32_62] : memref<2x2x!tpu.dma_semaphore, #tpu.memory_space<semaphore_mem>> -> memref<1x1x!tpu.dma_semaphore, #tpu.memory_space<semaphore_mem>>
      %134 = tpu.memref_squeeze %133 : memref<1x1x!tpu.dma_semaphore, #tpu.memory_space<semaphore_mem>> -> memref<!tpu.dma_semaphore, #tpu.memory_space<semaphore_mem>>
      tpu.enqueue_dma source(%131 : memref<1x32xf32, #tpu.memory_space<any>>) target(%132 : memref<1x32xf32, #tpu.memory_space<vmem>>) target_semaphore(%134 : memref<!tpu.dma_semaphore, #tpu.memory_space<semaphore_mem>>)
      %135 = arith.addi %55, %126 : i32
      %136 = arith.index_cast %135 : i32 to index
      %137 = memref.load %arg3[%136] : memref<32xi32, #tpu.memory_space<smem>>
      %c1_i32_65 = arith.constant 1 : i32
      %c0_i32_66 = arith.constant 0 : i32
      %138 = tpu.memref_slice %arg6[%137, %c0_i32_66] : memref<64x32xf32, #tpu.memory_space<any>> -> memref<1x32xf32, #tpu.memory_space<any>>
      %c0_i32_67 = arith.constant 0 : i32
      %139 = tpu.memref_slice %arg9[%127, %c0_i32_67] : memref<16x32xf32, #tpu.memory_space<vmem>> -> memref<1x32xf32, #tpu.memory_space<vmem>>
      %140 = tpu.memref_slice %arg10[%54, %c1_i32_65] : memref<2x2x!tpu.dma_semaphore, #tpu.memory_space<semaphore_mem>> -> memref<1x1x!tpu.dma_semaphore, #tpu.memory_space<semaphore_mem>>
      %141 = tpu.memref_squeeze %140 : memref<1x1x!tpu.dma_semaphore, #tpu.memory_space<semaphore_mem>> -> memref<!tpu.dma_semaphore, #tpu.memory_space<semaphore_mem>>
      tpu.enqueue_dma source(%138 : memref<1x32xf32, #tpu.memory_space<any>>) target(%139 : memref<1x32xf32, #tpu.memory_space<vmem>>) target_semaphore(%141 : memref<!tpu.dma_semaphore, #tpu.memory_space<semaphore_mem>>)
      %c5_i32 = arith.constant 5 : i32
      %142 = arith.addi %61, %c5_i32 : i32
      %143 = arith.addi %57, %142 : i32
      %144 = arith.addi %55, %142 : i32
      %145 = arith.index_cast %144 : i32 to index
      %146 = memref.load %arg2[%145] : memref<32xi32, #tpu.memory_space<smem>>
      %c0_i32_68 = arith.constant 0 : i32
      %c0_i32_69 = arith.constant 0 : i32
      %147 = tpu.memref_slice %arg5[%146, %c0_i32_69] : memref<64x32xf32, #tpu.memory_space<any>> -> memref<1x32xf32, #tpu.memory_space<any>>
      %c0_i32_70 = arith.constant 0 : i32
      %148 = tpu.memref_slice %arg8[%143, %c0_i32_70] : memref<16x32xf32, #tpu.memory_space<vmem>> -> memref<1x32xf32, #tpu.memory_space<vmem>>
      %149 = tpu.memref_slice %arg10[%54, %c0_i32_68] : memref<2x2x!tpu.dma_semaphore, #tpu.memory_space<semaphore_mem>> -> memref<1x1x!tpu.dma_semaphore, #tpu.memory_space<semaphore_mem>>
      %150 = tpu.memref_squeeze %149 : memref<1x1x!tpu.dma_semaphore, #tpu.memory_space<semaphore_mem>> -> memref<!tpu.dma_semaphore, #tpu.memory_space<semaphore_mem>>
      tpu.enqueue_dma source(%147 : memref<1x32xf32, #tpu.memory_space<any>>) target(%148 : memref<1x32xf32, #tpu.memory_space<vmem>>) target_semaphore(%150 : memref<!tpu.dma_semaphore, #tpu.memory_space<semaphore_mem>>)
      %151 = arith.addi %55, %142 : i32
      %152 = arith.index_cast %151 : i32 to index
      %153 = memref.load %arg3[%152] : memref<32xi32, #tpu.memory_space<smem>>
      %c1_i32_71 = arith.constant 1 : i32
      %c0_i32_72 = arith.constant 0 : i32
      %154 = tpu.memref_slice %arg6[%153, %c0_i32_72] : memref<64x32xf32, #tpu.memory_space<any>> -> memref<1x32xf32, #tpu.memory_space<any>>
      %c0_i32_73 = arith.constant 0 : i32
      %155 = tpu.memref_slice %arg9[%143, %c0_i32_73] : memref<16x32xf32, #tpu.memory_space<vmem>> -> memref<1x32xf32, #tpu.memory_space<vmem>>
      %156 = tpu.memref_slice %arg10[%54, %c1_i32_71] : memref<2x2x!tpu.dma_semaphore, #tpu.memory_space<semaphore_mem>> -> memref<1x1x!tpu.dma_semaphore, #tpu.memory_space<semaphore_mem>>
      %157 = tpu.memref_squeeze %156 : memref<1x1x!tpu.dma_semaphore, #tpu.memory_space<semaphore_mem>> -> memref<!tpu.dma_semaphore, #tpu.memory_space<semaphore_mem>>
      tpu.enqueue_dma source(%154 : memref<1x32xf32, #tpu.memory_space<any>>) target(%155 : memref<1x32xf32, #tpu.memory_space<vmem>>) target_semaphore(%157 : memref<!tpu.dma_semaphore, #tpu.memory_space<semaphore_mem>>)
      %c6_i32 = arith.constant 6 : i32
      %158 = arith.addi %61, %c6_i32 : i32
      %159 = arith.addi %57, %158 : i32
      %160 = arith.addi %55, %158 : i32
      %161 = arith.index_cast %160 : i32 to index
      %162 = memref.load %arg2[%161] : memref<32xi32, #tpu.memory_space<smem>>
      %c0_i32_74 = arith.constant 0 : i32
      %c0_i32_75 = arith.constant 0 : i32
      %163 = tpu.memref_slice %arg5[%162, %c0_i32_75] : memref<64x32xf32, #tpu.memory_space<any>> -> memref<1x32xf32, #tpu.memory_space<any>>
      %c0_i32_76 = arith.constant 0 : i32
      %164 = tpu.memref_slice %arg8[%159, %c0_i32_76] : memref<16x32xf32, #tpu.memory_space<vmem>> -> memref<1x32xf32, #tpu.memory_space<vmem>>
      %165 = tpu.memref_slice %arg10[%54, %c0_i32_74] : memref<2x2x!tpu.dma_semaphore, #tpu.memory_space<semaphore_mem>> -> memref<1x1x!tpu.dma_semaphore, #tpu.memory_space<semaphore_mem>>
      %166 = tpu.memref_squeeze %165 : memref<1x1x!tpu.dma_semaphore, #tpu.memory_space<semaphore_mem>> -> memref<!tpu.dma_semaphore, #tpu.memory_space<semaphore_mem>>
      tpu.enqueue_dma source(%163 : memref<1x32xf32, #tpu.memory_space<any>>) target(%164 : memref<1x32xf32, #tpu.memory_space<vmem>>) target_semaphore(%166 : memref<!tpu.dma_semaphore, #tpu.memory_space<semaphore_mem>>)
      %167 = arith.addi %55, %158 : i32
      %168 = arith.index_cast %167 : i32 to index
      %169 = memref.load %arg3[%168] : memref<32xi32, #tpu.memory_space<smem>>
      %c1_i32_77 = arith.constant 1 : i32
      %c0_i32_78 = arith.constant 0 : i32
      %170 = tpu.memref_slice %arg6[%169, %c0_i32_78] : memref<64x32xf32, #tpu.memory_space<any>> -> memref<1x32xf32, #tpu.memory_space<any>>
      %c0_i32_79 = arith.constant 0 : i32
      %171 = tpu.memref_slice %arg9[%159, %c0_i32_79] : memref<16x32xf32, #tpu.memory_space<vmem>> -> memref<1x32xf32, #tpu.memory_space<vmem>>
      %172 = tpu.memref_slice %arg10[%54, %c1_i32_77] : memref<2x2x!tpu.dma_semaphore, #tpu.memory_space<semaphore_mem>> -> memref<1x1x!tpu.dma_semaphore, #tpu.memory_space<semaphore_mem>>
      %173 = tpu.memref_squeeze %172 : memref<1x1x!tpu.dma_semaphore, #tpu.memory_space<semaphore_mem>> -> memref<!tpu.dma_semaphore, #tpu.memory_space<semaphore_mem>>
      tpu.enqueue_dma source(%170 : memref<1x32xf32, #tpu.memory_space<any>>) target(%171 : memref<1x32xf32, #tpu.memory_space<vmem>>) target_semaphore(%173 : memref<!tpu.dma_semaphore, #tpu.memory_space<semaphore_mem>>)
      %c7_i32 = arith.constant 7 : i32
      %174 = arith.addi %61, %c7_i32 : i32
      %175 = arith.addi %57, %174 : i32
      %176 = arith.addi %55, %174 : i32
      %177 = arith.index_cast %176 : i32 to index
      %178 = memref.load %arg2[%177] : memref<32xi32, #tpu.memory_space<smem>>
      %c0_i32_80 = arith.constant 0 : i32
      %c0_i32_81 = arith.constant 0 : i32
      %179 = tpu.memref_slice %arg5[%178, %c0_i32_81] : memref<64x32xf32, #tpu.memory_space<any>> -> memref<1x32xf32, #tpu.memory_space<any>>
      %c0_i32_82 = arith.constant 0 : i32
      %180 = tpu.memref_slice %arg8[%175, %c0_i32_82] : memref<16x32xf32, #tpu.memory_space<vmem>> -> memref<1x32xf32, #tpu.memory_space<vmem>>
      %181 = tpu.memref_slice %arg10[%54, %c0_i32_80] : memref<2x2x!tpu.dma_semaphore, #tpu.memory_space<semaphore_mem>> -> memref<1x1x!tpu.dma_semaphore, #tpu.memory_space<semaphore_mem>>
      %182 = tpu.memref_squeeze %181 : memref<1x1x!tpu.dma_semaphore, #tpu.memory_space<semaphore_mem>> -> memref<!tpu.dma_semaphore, #tpu.memory_space<semaphore_mem>>
      tpu.enqueue_dma source(%179 : memref<1x32xf32, #tpu.memory_space<any>>) target(%180 : memref<1x32xf32, #tpu.memory_space<vmem>>) target_semaphore(%182 : memref<!tpu.dma_semaphore, #tpu.memory_space<semaphore_mem>>)
      %183 = arith.addi %55, %174 : i32
      %184 = arith.index_cast %183 : i32 to index
      %185 = memref.load %arg3[%184] : memref<32xi32, #tpu.memory_space<smem>>
      %c1_i32_83 = arith.constant 1 : i32
      %c0_i32_84 = arith.constant 0 : i32
      %186 = tpu.memref_slice %arg6[%185, %c0_i32_84] : memref<64x32xf32, #tpu.memory_space<any>> -> memref<1x32xf32, #tpu.memory_space<any>>
      %c0_i32_85 = arith.constant 0 : i32
      %187 = tpu.memref_slice %arg9[%175, %c0_i32_85] : memref<16x32xf32, #tpu.memory_space<vmem>> -> memref<1x32xf32, #tpu.memory_space<vmem>>
      %188 = tpu.memref_slice %arg10[%54, %c1_i32_83] : memref<2x2x!tpu.dma_semaphore, #tpu.memory_space<semaphore_mem>> -> memref<1x1x!tpu.dma_semaphore, #tpu.memory_space<semaphore_mem>>
      %189 = tpu.memref_squeeze %188 : memref<1x1x!tpu.dma_semaphore, #tpu.memory_space<semaphore_mem>> -> memref<!tpu.dma_semaphore, #tpu.memory_space<semaphore_mem>>
      tpu.enqueue_dma source(%186 : memref<1x32xf32, #tpu.memory_space<any>>) target(%187 : memref<1x32xf32, #tpu.memory_space<vmem>>) target_semaphore(%189 : memref<!tpu.dma_semaphore, #tpu.memory_space<semaphore_mem>>)
      %c1_i32_86 = arith.constant 1 : i32
    } else {
    }
    %c8_i32 = arith.constant 8 : i32
    %19 = arith.muli %11, %c8_i32 : i32
    %20 = tpu.assume_multiple %19, 8 : i32
    %c0_i32_9 = arith.constant 0 : i32
    %c0_i32_10 = arith.constant 0 : i32
    %21 = tpu.memref_slice %arg8[%20, %c0_i32_10] : memref<16x32xf32, #tpu.memory_space<vmem>> -> memref<8x32xf32, #tpu.memory_space<vmem>>
    %c0_i32_11 = arith.constant 0 : i32
    %22 = tpu.memref_slice %arg8[%20, %c0_i32_11] : memref<16x32xf32, #tpu.memory_space<vmem>> -> memref<8x32xf32, #tpu.memory_space<vmem>>
    %23 = tpu.memref_slice %arg10[%11, %c0_i32_9] : memref<2x2x!tpu.dma_semaphore, #tpu.memory_space<semaphore_mem>> -> memref<1x1x!tpu.dma_semaphore, #tpu.memory_space<semaphore_mem>>
    %24 = tpu.memref_squeeze %23 : memref<1x1x!tpu.dma_semaphore, #tpu.memory_space<semaphore_mem>> -> memref<!tpu.dma_semaphore, #tpu.memory_space<semaphore_mem>>
    tpu.wait_dma2 semaphore(%24 : memref<!tpu.dma_semaphore, #tpu.memory_space<semaphore_mem>>) src(%21 : memref<8x32xf32, #tpu.memory_space<vmem>>) dst(%22 : memref<8x32xf32, #tpu.memory_space<vmem>>)
    %c1_i32_12 = arith.constant 1 : i32
    %c0_i32_13 = arith.constant 0 : i32
    %25 = tpu.memref_slice %arg9[%20, %c0_i32_13] : memref<16x32xf32, #tpu.memory_space<vmem>> -> memref<8x32xf32, #tpu.memory_space<vmem>>
    %c0_i32_14 = arith.constant 0 : i32
    %26 = tpu.memref_slice %arg9[%20, %c0_i32_14] : memref<16x32xf32, #tpu.memory_space<vmem>> -> memref<8x32xf32, #tpu.memory_space<vmem>>
    %27 = tpu.memref_slice %arg10[%11, %c1_i32_12] : memref<2x2x!tpu.dma_semaphore, #tpu.memory_space<semaphore_mem>> -> memref<1x1x!tpu.dma_semaphore, #tpu.memory_space<semaphore_mem>>
    %28 = tpu.memref_squeeze %27 : memref<1x1x!tpu.dma_semaphore, #tpu.memory_space<semaphore_mem>> -> memref<!tpu.dma_semaphore, #tpu.memory_space<semaphore_mem>>
    tpu.wait_dma2 semaphore(%28 : memref<!tpu.dma_semaphore, #tpu.memory_space<semaphore_mem>>) src(%25 : memref<8x32xf32, #tpu.memory_space<vmem>>) dst(%26 : memref<8x32xf32, #tpu.memory_space<vmem>>)
    %c8_i32_15 = arith.constant 8 : i32
    %29 = arith.muli %11, %c8_i32_15 : i32
    %30 = tpu.assume_multiple %29, 8 : i32
    %31 = arith.index_cast %30 : i32 to index
    %c0 = arith.constant 0 : index
    %32 = vector.load %arg8[%31, %c0] : memref<16x32xf32, #tpu.memory_space<vmem>>, vector<8x32xf32>
    %33 = arith.index_cast %30 : i32 to index
    %c0_16 = arith.constant 0 : index
    %34 = vector.load %arg9[%33, %c0_16] : memref<16x32xf32, #tpu.memory_space<vmem>>, vector<8x32xf32>
    %c0_17 = arith.constant 0 : index
    %c0_18 = arith.constant 0 : index
    %35 = vector.load %arg4[%c0_17, %c0_18] : memref<8x8xf32, #tpu.memory_space<vmem>>, vector<8x1xf32>
    %c0_19 = arith.constant 0 : index
    %c1 = arith.constant 1 : index
    %36 = vector.load %arg4[%c0_19, %c1] : memref<8x8xf32, #tpu.memory_space<vmem>>, vector<8x1xf32>
    %37 = arith.mulf %32, %34 : vector<8x32xf32>
    %cst = arith.constant dense<0.000000e+00> : vector<8xf32>
    %38 = vector.multi_reduction <add>, %37, %cst [1] : vector<8x32xf32> to vector<8xf32>
    %39 = vector.shape_cast %38 : vector<8xf32> to vector<8x1xf32>
    %40 = arith.addf %39, %35 : vector<8x1xf32>
    %c0_20 = arith.constant 0 : index
    %c0_21 = arith.constant 0 : index
    %c0_22 = arith.constant 0 : index
    %41 = vector.load %arg7[%c0_20, %c0_21, %c0_22] : memref<1x8x128xf32, #tpu.memory_space<vmem>>, vector<1x8x128xf32>
    %42 = arith.mulf %36, %40 : vector<8x1xf32>
    %43 = arith.mulf %42, %40 : vector<8x1xf32>
    %44 = vector.shape_cast %43 : vector<8x1xf32> to vector<1x8x1xf32>
    %cst_23 = arith.constant dense<0.000000e+00> : vector<1xf32>
    %45 = vector.multi_reduction <add>, %44, %cst_23 [1, 2] : vector<1x8x1xf32> to vector<1xf32>
    %46 = vector.shape_cast %45 : vector<1xf32> to vector<1x1x1xf32>
    %47 = vector.extract %46[0, 0, 0] : f32 from vector<1x1x1xf32>
    %48 = vector.broadcast %47 : f32 to vector<1x1xf32>
    %49 = vector.shape_cast %48 : vector<1x1xf32> to vector<1x1x1xf32>
    %50 = vector.broadcast %49 : vector<1x1x1xf32> to vector<1x8x128xf32>
    %51 = arith.addf %41, %50 : vector<1x8x128xf32>
    %c0_24 = arith.constant 0 : index
    %c0_25 = arith.constant 0 : index
    %c0_26 = arith.constant 0 : index
    %52 = vector.load %arg7[%c0_24, %c0_25, %c0_26] : memref<1x8x128xf32, #tpu.memory_space<vmem>>, vector<1x8x128xf32>
    tpu.vector_store %arg7[%c0_24, %c0_25, %c0_26], %51 {strides = array<i32>} : memref<1x8x128xf32, #tpu.memory_space<vmem>>, vector<1x8x128xf32>,
    return
  }
  func.func @transform_0(%arg0: i32, %arg1: i32, %arg2: memref<32xi32, #tpu.memory_space<smem>>, %arg3: memref<32xi32, #tpu.memory_space<smem>>) -> (i32, i32) {
    %c2_i32 = arith.constant 2 : i32
    %0 = arith.muli %arg0, %c2_i32 : i32
    %1 = arith.addi %0, %arg1 : i32
    %c0_i32 = arith.constant 0 : i32
    %c0_i32_0 = arith.constant 0 : i32
    return %1, %c0_i32 : i32, i32
  }
  func.func @transform_3(%arg0: i32, %arg1: i32, %arg2: memref<32xi32, #tpu.memory_space<smem>>, %arg3: memref<32xi32, #tpu.memory_space<smem>>) -> (i32, i32, i32) {
    %c0_i32 = arith.constant 0 : i32
    %c0_i32_0 = arith.constant 0 : i32
    %c0_i32_1 = arith.constant 0 : i32
    return %arg0, %c0_i32, %c0_i32_0 : i32, i32, i32
  }
}

</mosaic_0001>

<bundles_post_ra>
// kernel: tpu_custom_call.1
= control target key start
LH: loop header
LB: loop body
LE: loop exit
PB: predicated region body
PF: predicated region fallthrough
CT: control target
= control target key end

     0   :  { %s3038_s0 = inlined_call_operand.vmem [shape: s32[32], index: 0, kind: input, shape index: {}]   ;;  %s3039_s2 = inlined_call_operand.vmem [shape: f32[32,8], index: 2, kind: input, shape index: {}]   ;;  %s3040_s3 = inlined_call_operand.vmem [shape: f32[64,32], index: 3, kind: input, shape index: {}]   ;;  %s3041_s4 = inlined_call_operand.vmem [shape: f32[64,32], index: 4, kind: input, shape index: {}]   ;;  %s3042_s5 = inlined_call_operand.hbm [shape: f32[2,8,128], index: 5, kind: output, shape index: {}]   ;;  %s3043_s1 = inlined_call_operand.vmem [shape: s32[32], index: 1, kind: input, shape index: {}]  }
   0x1   :  { %3048 = sst [smem:[#allocation50_spill]] %s3039_s2  ;;  %s10_s20 = sshll.u32 %s3038_s0, 4  ;;  %s11_s20 = int_to_ptr.vmem [resolvable:$true] %s10_s20 }
   0x2   :  { %s14_s23 = sshll.u32 %s3043_s1, 4  ;;  %s2565_s24 = scalar_lea.vmem %s11_s20, 16  ;;  %s15_s23 = int_to_ptr.vmem [resolvable:$true] %s14_s23 }
   0x3   :  { %p2566_p0 = scmp.ne.s32.totalorder %s11_s20, %s2565_s24  ;;  %p2570_p1 = scmp.lt.s32.totalorder %s11_s20, %s11_s20 }
   0x4   :  { %p2571_p2 = scmp.lt.s32.totalorder %s2565_s24, %s2565_s24 }
   0x6   :  { %p2572_p3 = por %p2571_p2, %p2570_p1 }
   0x8   :  { %p2573_p4 = pnand %p2572_p3, %p2566_p0 }
   0xa   :  { %2576 = shalt.err (!%p2573_p4)  }
   0xb   :  { %s2689_s25 = smov [#allocation6]   ;;  %s2577_s26 = scalar_lea.vmem %s15_s23, 16 }
   0xc   :  { %13 = dma.vmem_to_smem %s11_s20, 16, %s2689_s25, [#allocation5] }
   0xd   :  { %p2578_p5 = scmp.ne.s32.totalorder %s15_s23, %s2577_s26  ;;  %p2582_p6 = scmp.lt.s32.totalorder %s15_s23, %s15_s23 }
   0xe   :  { %p2583_p7 = scmp.lt.s32.totalorder %s2577_s26, %s2577_s26 }
  0x10   :  { %p2584_p8 = por %p2583_p7, %p2582_p6 }
  0x12   :  { %p2585_p9 = pnand %p2584_p8, %p2578_p5 }
  0x14   :  { %2588 = shalt.err (!%p2585_p9)  }
  0x15   :  { %s2690_s0 = smov [#allocation7]  }
  0x16   :  { %17 = dma.vmem_to_smem %s15_s23, 16, %s2690_s0, [#allocation5] }
  0x17   :  { %2647 = dma.done.wait [#allocation5], 32 }
  0x18   :  { %2648 = vsyncadd [#allocation5], 4294967264 }
  0x19   :  { %19 = sfence }
  0x1a   :  { %20 = vsyncpa [#allocation9], 0 }
  0x1b   :  { %22 = vsyncpa [#allocation9 + $0x1], 0  ;;  %s2731_s1 = smov 0   ;;  %s2733_s27 = smov 0  }
  0x1c   :  { %s2735_s28 = smov 0   ;;  %s2737_s29 = smov 0  }
  0x1d   :  { %s2739_s30 = smov 0   ;;  %s2741_s6 = smov 0  }
  0x1e   :  { %s2743_s7 = smov 0   ;;  %s2745_s8 = smov 0  }
  0x1f LB: > { %3049 = sst [smem:[#allocation46_spill]] %s2679_s6  ;;  %s2411_s9 = sadd.s32 4294967295, %s2687_s8   ;;  %s2687_s8 = sphi %s2745_s8, %s28_s8   ;;  %s2683_s7 = sphi %s2743_s7, %s3060_s7   ;;  %s2679_s6 = sphi %s2741_s6, %s3059_s6   ;;  %s2675_s30 = sphi %s2739_s30, %s3058_s30   ;;  %s2671_s29 = sphi %s2737_s29, %s3057_s29   ;;  %s2667_s28 = sphi %s2735_s28, %s3063_s28   ;;  %s2663_s27 = sphi %s2733_s27, %s3062_s27   ;;  %s2659_s1 = sphi %s2731_s1, %s3061_s1  }
  0x20   : > { %3050 = sst [smem:[#allocation47_spill]] %s2683_s7  ;;  %s2412_s10 = sadd.s32 4294967294, %s2687_s8  }
  0x21   : > { %s37_s11 = sadd.s32 1, %s2679_s6  ;;  %s40_s12 = sadd.s32 1, %s2683_s7 }
  0x22   : > { %p38_p10 = scmp.ge.s32.totalorder %s37_s11, 2  ;;  %p87_p11 = scmp.ne.s32.totalorder %s2667_s28, %s2663_s27 }
  0x23   : > { %p88_p12 = scmp.eq.s32.totalorder %s2411_s9, 3  ;;  %p93_p0 = scmp.ne.s32.totalorder %s2663_s27, %s2659_s1 }
  0x24   : > { %s3065_s11 = smov (%p38_p10, %s37_s11), 0  ;;  %s3067_s12 = smov (!%p38_p10, %s40_s12), %s2683_s7 }
  0x25   : > { %3051 = sst [smem:[#allocation48_spill]] %s3065_s11  ;;  %p2780_p13 = por %p88_p12, %p87_p11 }
  0x26   : > { %p42_p1 = scmp.ge.s32.totalorder %s3067_s12, 2  ;;  %p94_p2 = scmp.eq.s32.totalorder %s2412_s10, 3 }
  0x27   : > { %p2417_p3 = scmp.ge.s32.totalorder %s2687_s8, 1  ;;  %p123_p4 = scmp.lt.s32.totalorder %s2687_s8, 5 }
  0x28   : > { %s3069_s12 = smov (%p42_p1, %s3067_s12), 0  ;;  %p2790_p5 = por %p94_p2, %p93_p0 }
  0x29   : > { %3053 = sst [smem:[#allocation49_spill]] %s3069_s12  ;;  %p124_p6 = pnand %p2417_p3, %p123_p4 }
  0x2a   : > { %s74_s15 = ssub.s32 %s2683_s7, %s3069_s12  ;;  %s77_s16 = sadd.s32 1, %s2667_s28 }
  0x2b   : > { %p75_p7 = scmp.eq.s32.totalorder %s74_s15, 0  ;;  %127 = sbr.rel (%p124_p6) target bundleno = 966 (0x3c6), region = 24 }
  0x2c   : > { %s3044_s18 = sand.u32 (!%p124_p6), 1, %s2663_s27   ;;  %s2419_s19 = sshll.u32 (!%p124_p6), %s2675_s30, 1 }
  0x2d   : > { %s2798_s17 = scalar_select %p75_p7, %s2667_s28, %s77_s16  }
  0x2e   : > { %s2418_s20 = sshll.u32 (!%p124_p6), %s3044_s18, 3  ;;  %s2805_s21 = sadd.s32 (!%p124_p6), %s2671_s29, %s2419_s19 }
  0x2f   : > { %p146_p8 = scmp.lt.s32.totalorder (!%p124_p6), %s2805_s21, 3  ;;  %p154_p9 = scmp.lt.s32.totalorder (!%p124_p6), %s2671_s29, 0 }
  0x30   : > { %s155_s22 = ssub.s32 0, %s2671_s29  ;;  %s3055_s2 = sld [smem:[#allocation50_spill]] }
  0x31   : > { %s147_s23 = scalar_select %p146_p8, %s2805_s21, 3 }
  0x32   : > { %s2422_s24 = smin.u32 %s2671_s29, %s155_s22  ;;  %s2819_s19 = scalar_lea.vmem [#allocation8], %s2418_s20 }
  0x33   : > { %s2420_s25 = sshll.u32 %s147_s23, 3  ;;  %s157_s26 = sand.u32 1, %s2422_s24  }
  0x34   : > { %s158_s15 = ssub.s32 0, %s157_s26  ;;  %p2425_p11 = scmp.ne.s32.totalorder %s2671_s29, 0 }
  0x35   : > { %s3071_s15 = smov (!%p154_p9, %s158_s15), %s157_s26  ;;  %s2823_s22 = sshll.u32 (!%p2425_p11), %s2805_s21, 3 }
  0x36   : > { %s2815_s10 = scalar_lea.vmem %s3055_s2, %s2420_s25  ;;  %p2424_p10 = scmp.lt.s32.totalorder %s3071_s15, 0 }
  0x37   : > { %s164_s16 = sadd.s32 2, %s3071_s15  ;;  %169 = sbr.rel (%p2425_p11) target bundleno = 208 (0xd0), region = 28 }
  0x38   : > { %s3073_s16 = smov (!%p2424_p10, %s164_s16), %s3071_s15  ;;  %s174_s23 = sld [smem:[#allocation6 + %s2823_s22]] (!%p2425_p11) }
  0x3c   : > { %v2691_v0 = vmov 0.0  }
  0x3d   : > { %170 = vst [vmem:[%s2819_s19] sm:$0xff] %v2691_v0 }
  0x3e   : > { %s175_s26 = scalar_lea.vmem %s3040_s3, %s174_s23 }
  0x3f   : > { %v195_v1 = vld [vmem:[%s175_s26] sm:$0x1] }
  0x40   : > { %196 = vst [vmem:[#allocation2] sm:$0x1] %v195_v1 }
  0x41   : > { %222 = vsyncadd [#allocation4], 16  ;;  %s223_s20 = sld [smem:[#allocation7 + %s2823_s22]] }
  0x47   : > { %s224_s15 = scalar_lea.vmem %s3041_s4, %s223_s20 }
  0x48   : > { %v245_v2 = vld [vmem:[%s224_s15] sm:$0x1] }
  0x49   : > { %246 = vst [vmem:[#allocation3] sm:$0x1] %v245_v2 }
  0x4a   : > { %272 = vsyncadd [#allocation4 + $0x1], 16  ;;  %s275_s18 = sadd.s32 1, %s2823_s22 }
  0x4b   : > { %s276_s2 = sld [smem:[#allocation6 + %s275_s18]] }
  0x51   : > { %s277_s24 = scalar_lea.vmem %s3040_s3, %s276_s2 }
  0x52   : > { %v297_v3 = vld [vmem:[%s277_s24] sm:$0x1] }
  0x53   : > { %298 = vst [vmem:[#allocation2 + $0x1] sm:$0x1] %v297_v3 }
  0x54   : > { %324 = vsyncadd [#allocation4], 16  ;;  %s325_s23 = sld [smem:[#allocation7 + %s275_s18]] }
  0x5a   : > { %s326_s7 = scalar_lea.vmem %s3041_s4, %s325_s23 }
  0x5b   : > { %v346_v4 = vld [vmem:[%s326_s7] sm:$0x1] }
  0x5c   : > { %347 = vst [vmem:[#allocation3 + $0x1] sm:$0x1] %v346_v4 }
  0x5d   : > { %373 = vsyncadd [#allocation4 + $0x1], 16  ;;  %s376_s20 = sadd.s32 2, %s2823_s22 }
  0x5e   : > { %s377_s0 = sld [smem:[#allocation6 + %s376_s20]] }
  0x64   : > { %s378_s6 = scalar_lea.vmem %s3040_s3, %s377_s0 }
  0x65   : > { %v398_v5 = vld [vmem:[%s378_s6] sm:$0x1] }
  0x66   : > { %399 = vst [vmem:[#allocation2 + $0x2] sm:$0x1] %v398_v5 }
  0x67   : > { %425 = vsyncadd [#allocation4], 16  ;;  %s426_s2 = sld [smem:[#allocation7 + %s376_s20]] }
  0x6d   : > { %s427_s18 = scalar_lea.vmem %s3041_s4, %s426_s2 }
  0x6e   : > { %v447_v6 = vld [vmem:[%s427_s18] sm:$0x1] }
  0x6f   : > { %448 = vst [vmem:[#allocation3 + $0x2] sm:$0x1] %v447_v6 }
  0x70   : > { %474 = vsyncadd [#allocation4 + $0x1], 16  ;;  %s477_s7 = sadd.s32 3, %s2823_s22 }
  0x71   : > { %s478_s24 = sld [smem:[#allocation6 + %s477_s7]] }
  0x77   : > { %s479_s26 = scalar_lea.vmem %s3040_s3, %s478_s24 }
  0x78   : > { %v499_v7 = vld [vmem:[%s479_s26] sm:$0x1] }
  0x79   : > { %500 = vst [vmem:[#allocation2 + $0x3] sm:$0x1] %v499_v7 }
  0x7a   : > { %526 = vsyncadd [#allocation4], 16  ;;  %s527_s6 = sld [smem:[#allocation7 + %s477_s7]] }
  0x80   : > { %s528_s9 = scalar_lea.vmem %s3041_s4, %s527_s6 }
  0x81   : > { %v548_v8 = vld [vmem:[%s528_s9] sm:$0x1] }
  0x82   : > { %549 = vst [vmem:[#allocation3 + $0x3] sm:$0x1] %v548_v8 }
  0x83   : > { %575 = vsyncadd [#allocation4 + $0x1], 16  ;;  %s578_s15 = sadd.s32 4, %s2823_s22 }
  0x84   : > { %s579_s2 = sld [smem:[#allocation6 + %s578_s15]] }
  0x8a   : > { %s580_s18 = scalar_lea.vmem %s3040_s3, %s579_s2 }
  0x8b   : > { %v600_v9 = vld [vmem:[%s580_s18] sm:$0x1] }
  0x8c   : > { %601 = vst [vmem:[#allocation2 + $0x4] sm:$0x1] %v600_v9 }
  0x8d   : > { %627 = vsyncadd [#allocation4], 16  ;;  %s628_s24 = sld [smem:[#allocation7 + %s578_s15]] }
  0x93   : > { %s629_s25 = scalar_lea.vmem %s3041_s4, %s628_s24 }
  0x94   : > { %v649_v10 = vld [vmem:[%s629_s25] sm:$0x1] }
  0x95   : > { %650 = vst [vmem:[#allocation3 + $0x4] sm:$0x1] %v649_v10 }
  0x96   : > { %676 = vsyncadd [#allocation4 + $0x1], 16  ;;  %s679_s26 = sadd.s32 5, %s2823_s22 }
  0x97   : > { %s680_s6 = sld [smem:[#allocation6 + %s679_s26]] }
  0x9d   : > { %s681_s9 = scalar_lea.vmem %s3040_s3, %s680_s6 }
  0x9e   : > { %v701_v11 = vld [vmem:[%s681_s9] sm:$0x1] }
  0x9f   : > { %702 = vst [vmem:[#allocation2 + $0x5] sm:$0x1] %v701_v11 }
  0xa0   : > { %728 = vsyncadd [#allocation4], 16  ;;  %s729_s2 = sld [smem:[#allocation7 + %s679_s26]] }
  0xa6   : > { %s730_s12 = scalar_lea.vmem %s3041_s4, %s729_s2 }
  0xa7   : > { %v750_v12 = vld [vmem:[%s730_s12] sm:$0x1] }
  0xa8   : > { %751 = vst [vmem:[#allocation3 + $0x5] sm:$0x1] %v750_v12 }
  0xa9   : > { %777 = vsyncadd [#allocation4 + $0x1], 16  ;;  %s780_s18 = sadd.s32 6, %s2823_s22 }
  0xaa   : > { %s781_s24 = sld [smem:[#allocation6 + %s780_s18]] }
  0xb0   : > { %s782_s25 = scalar_lea.vmem %s3040_s3, %s781_s24 }
  0xb1   : > { %v802_v13 = vld [vmem:[%s782_s25] sm:$0x1] }
  0xb2   : > { %803 = vst [vmem:[#allocation2 + $0x6] sm:$0x1] %v802_v13 }
  0xb3   : > { %829 = vsyncadd [#allocation4], 16  ;;  %s830_s6 = sld [smem:[#allocation7 + %s780_s18]] }
  0xb9   : > { %s831_s20 = scalar_lea.vmem %s3041_s4, %s830_s6 }
  0xba   : > { %v851_v14 = vld [vmem:[%s831_s20] sm:$0x1] }
  0xbb   : > { %852 = vst [vmem:[#allocation3 + $0x6] sm:$0x1] %v851_v14 }
  0xbc   : > { %878 = vsyncadd [#allocation4 + $0x1], 16  ;;  %s881_s9 = sadd.s32 7, %s2823_s22 }
  0xbd   : > { %s882_s2 = sld [smem:[#allocation6 + %s881_s9]] }
  0xc3   : > { %s883_s12 = scalar_lea.vmem %s3040_s3, %s882_s2 }
  0xc4   : > { %v903_v15 = vld [vmem:[%s883_s12] sm:$0x1] }
  0xc5   : > { %904 = vst [vmem:[#allocation2 + $0x7] sm:$0x1] %v903_v15 }
  0xc6   : > { %930 = vsyncadd [#allocation4], 16  ;;  %s931_s24 = sld [smem:[#allocation7 + %s881_s9]] }
  0xcc   : > { %s932_s7 = scalar_lea.vmem %s3041_s4, %s931_s24 }
  0xcd   : > { %v952_v16 = vld [vmem:[%s932_s7] sm:$0x1] }
  0xce   : > { %953 = vst [vmem:[#allocation3 + $0x7] sm:$0x1] %v952_v16 }
  0xcf   : > { %979 = vsyncadd [#allocation4 + $0x1], 16 }
  0xd0 PF: > { %s980_s25 = sadd.s32 1, %s2671_s29 }
  0xd1   : > { %p2427_p12 = scmp.ge.s32.totalorder %s980_s25, 2 }
  0xd2   : > { %s986_s22 = ssub.s32 (!%p2427_p12), 1, %s3073_s16  ;;  %s2485_s6 = sshll.u32 (!%p2427_p12), %s2805_s21, 3 }
  0xd3   : > { %984 = sbr.rel (%p2427_p12) target bundleno = 364 (0x16c), region = 512  ;;  %s2886_s0 = sadd.s32 (!%p2427_p12), 8, %s2485_s6 }
  0xd4   : > { %s991_s26 = sld [smem:[#allocation6 + %s2886_s0]] (!%p2427_p12)  ;;  %s2430_s20 = sshll.u32 (!%p2427_p12), %s986_s22, 1 }
  0xd5   : > { %s2429_s9 = sshll.u32 (!%p2427_p12), %s986_s22, 3  ;;  %s2895_s29 = scalar_lea.sflag (!%p2427_p12), [#allocation4], %s2430_s20 }
  0xd6   : > { %s2892_s12 = scalar_lea.vmem (!%p2427_p12), [#allocation2], %s2429_s9 }
  0xda   : > { %s992_s15 = scalar_lea.vmem %s3040_s3, %s991_s26 }
  0xdb   : > { %v1014_v17 = vld [vmem:[%s992_s15] sm:$0x1] }
  0xdc   : > { %1015 = vst [vmem:[%s2892_s12] sm:$0x1] %v1014_v17 }
  0xdd   : > { %1041 = vsyncadd %s2895_s29, 16  ;;  %s1042_s21 = sld [smem:[#allocation7 + %s2886_s0]]  ;;  %s2900_s24 = scalar_lea.sflag %s2895_s29, 1 [#allocation4] }
  0xde   : > { %s2905_s25 = scalar_lea.vmem [#allocation3], %s2429_s9 }
  0xe3   : > { %s1043_s7 = scalar_lea.vmem %s3041_s4, %s1042_s21 }
  0xe4   : > { %v1065_v18 = vld [vmem:[%s1043_s7] sm:$0x1] }
  0xe5   : > { %1066 = vst [vmem:[%s2905_s25] sm:$0x1] %v1065_v18 }
  0xe6   : > { %1092 = vsyncadd %s2900_s24, 16  ;;  %s1095_s22 = sadd.s32 1, %s2886_s0 }
  0xe7   : > { %s1096_s6 = sld [smem:[#allocation6 + %s1095_s22]] }
  0xed   : > { %s1097_s2 = scalar_lea.vmem %s3040_s3, %s1096_s6 }
  0xee   : > { %v1117_v19 = vld [vmem:[%s1097_s2] sm:$0x1] }
  0xef   : > { %2434 = vst [vmem:[%s2892_s12 + $0x1] sm:$0x1] %v1117_v19 }
  0xf0   : > { %1144 = vsyncadd %s2895_s29, 16  ;;  %s1145_s11 = sld [smem:[#allocation7 + %s1095_s22]] }
  0xf6   : > { %s1146_s21 = scalar_lea.vmem %s3041_s4, %s1145_s11 }
  0xf7   : > { %v1166_v20 = vld [vmem:[%s1146_s21] sm:$0x1] }
  0xf8   : > { %2437 = vst [vmem:[%s2905_s25 + $0x1] sm:$0x1] %v1166_v20 }
  0xf9   : > { %1193 = vsyncadd %s2900_s24, 16  ;;  %s1196_s23 = sadd.s32 2, %s2886_s0 }
  0xfa   : > { %s1197_s18 = sld [smem:[#allocation6 + %s1196_s23]] }
 0x100   : > { %s1198_s26 = scalar_lea.vmem %s3040_s3, %s1197_s18 }
 0x101   : > { %v1218_v21 = vld [vmem:[%s1198_s26] sm:$0x1] }
 0x102   : > { %2440 = vst [vmem:[%s2892_s12 + $0x2] sm:$0x1] %v1218_v21 }
 0x103   : > { %1245 = vsyncadd %s2895_s29, 16  ;;  %s1246_s22 = sld [smem:[#allocation7 + %s1196_s23]] }
 0x109   : > { %s1247_s11 = scalar_lea.vmem %s3041_s4, %s1246_s22 }
 0x10a   : > { %v1267_v22 = vld [vmem:[%s1247_s11] sm:$0x1] }
 0x10b   : > { %2443 = vst [vmem:[%s2905_s25 + $0x2] sm:$0x1] %v1267_v22 }
 0x10c   : > { %1294 = vsyncadd %s2900_s24, 16  ;;  %s1297_s9 = sadd.s32 3, %s2886_s0 }
 0x10d   : > { %s1298_s15 = sld [smem:[#allocation6 + %s1297_s9]] }
 0x113   : > { %s1299_s7 = scalar_lea.vmem %s3040_s3, %s1298_s15 }
 0x114   : > { %v1319_v23 = vld [vmem:[%s1299_s7] sm:$0x1] }
 0x115   : > { %2446 = vst [vmem:[%s2892_s12 + $0x3] sm:$0x1] %v1319_v23 }
 0x116   : > { %1346 = vsyncadd %s2895_s29, 16  ;;  %s1347_s23 = sld [smem:[#allocation7 + %s1297_s9]] }
 0x11c   : > { %s1348_s22 = scalar_lea.vmem %s3041_s4, %s1347_s23 }
 0x11d   : > { %v1368_v24 = vld [vmem:[%s1348_s22] sm:$0x1] }
 0x11e   : > { %2449 = vst [vmem:[%s2905_s25 + $0x3] sm:$0x1] %v1368_v24 }
 0x11f   : > { %1395 = vsyncadd %s2900_s24, 16  ;;  %s1398_s20 = sadd.s32 4, %s2886_s0 }
 0x120   : > { %s1399_s2 = sld [smem:[#allocation6 + %s1398_s20]] }
 0x126   : > { %s1400_s21 = scalar_lea.vmem %s3040_s3, %s1399_s2 }
 0x127   : > { %v1420_v25 = vld [vmem:[%s1400_s21] sm:$0x1] }
 0x128   : > { %2452 = vst [vmem:[%s2892_s12 + $0x4] sm:$0x1] %v1420_v25 }
 0x129   : > { %1447 = vsyncadd %s2895_s29, 16  ;;  %s1448_s9 = sld [smem:[#allocation7 + %s1398_s20]] }
 0x12f   : > { %s1449_s23 = scalar_lea.vmem %s3041_s4, %s1448_s9 }
 0x130   : > { %v1469_v26 = vld [vmem:[%s1449_s23] sm:$0x1] }
 0x131   : > { %2455 = vst [vmem:[%s2905_s25 + $0x4] sm:$0x1] %v1469_v26 }
 0x132   : > { %1496 = vsyncadd %s2900_s24, 16  ;;  %s1499_s6 = sadd.s32 5, %s2886_s0 }
 0x133   : > { %s1500_s26 = sld [smem:[#allocation6 + %s1499_s6]] }
 0x139   : > { %s1501_s11 = scalar_lea.vmem %s3040_s3, %s1500_s26 }
 0x13a   : > { %v1521_v27 = vld [vmem:[%s1501_s11] sm:$0x1] }
 0x13b   : > { %2458 = vst [vmem:[%s2892_s12 + $0x5] sm:$0x1] %v1521_v27 }
 0x13c   : > { %1548 = vsyncadd %s2895_s29, 16  ;;  %s1549_s20 = sld [smem:[#allocation7 + %s1499_s6]] }
 0x142   : > { %s1550_s9 = scalar_lea.vmem %s3041_s4, %s1549_s20 }
 0x143   : > { %v1570_v28 = vld [vmem:[%s1550_s9] sm:$0x1] }
 0x144   : > { %2461 = vst [vmem:[%s2905_s25 + $0x5] sm:$0x1] %v1570_v28 }
 0x145   : > { %1597 = vsyncadd %s2900_s24, 16  ;;  %s1600_s18 = sadd.s32 6, %s2886_s0 }
 0x146   : > { %s1601_s7 = sld [smem:[#allocation6 + %s1600_s18]] }
 0x14c   : > { %s1602_s22 = scalar_lea.vmem %s3040_s3, %s1601_s7 }
 0x14d   : > { %v1622_v29 = vld [vmem:[%s1602_s22] sm:$0x1] }
 0x14e   : > { %2464 = vst [vmem:[%s2892_s12 + $0x6] sm:$0x1] %v1622_v29 }
 0x14f   : > { %1649 = vsyncadd %s2895_s29, 16  ;;  %s1650_s6 = sld [smem:[#allocation7 + %s1600_s18]] }
 0x155   : > { %s1651_s20 = scalar_lea.vmem %s3041_s4, %s1650_s6 }
 0x156   : > { %v1671_v30 = vld [vmem:[%s1651_s20] sm:$0x1] }
 0x157   : > { %2467 = vst [vmem:[%s2905_s25 + $0x6] sm:$0x1] %v1671_v30 }
 0x158   : > { %1698 = vsyncadd %s2900_s24, 16  ;;  %s1701_s15 = sadd.s32 7, %s2886_s0 }
 0x159   : > { %s1702_s21 = sld [smem:[#allocation6 + %s1701_s15]] }
 0x15f   : > { %s1703_s23 = scalar_lea.vmem %s3040_s3, %s1702_s21 }
 0x160   : > { %v1723_v31 = vld [vmem:[%s1703_s23] sm:$0x1] }
 0x161   : > { %2470 = vst [vmem:[%s2892_s12 + $0x7] sm:$0x1] %v1723_v31 }
 0x162   : > { %1750 = vsyncadd %s2895_s29, 16  ;;  %s1751_s18 = sld [smem:[#allocation7 + %s1701_s15]] }
 0x168   : > { %s1752_s6 = scalar_lea.vmem %s3041_s4, %s1751_s18 }
 0x169   : > { %v1772_v32 = vld [vmem:[%s1752_s6] sm:$0x1] }
 0x16a   : > { %2473 = vst [vmem:[%s2905_s25 + $0x7] sm:$0x1] %v1772_v32 }
 0x16b   : > { %1799 = vsyncadd %s2900_s24, 16 }
 0x16c PF: > { %s2474_s0 = sshll.u32 %s3073_s16, 3  ;;  %s2475_s2 = sshll.u32 %s3073_s16, 1 }
 0x16d   : > { %s1802_s11 = scalar_lea.sflag [#allocation4], %s2475_s2 }
 0x16e   : > { %2649 = dma.done.wait %s1802_s11, 128 }
 0x16f   : > { %2650 = vsyncadd %s1802_s11, 4294967168  ;;  %s2110_s12 = scalar_lea.sflag %s1802_s11, 1 [#allocation4] }
 0x170   : > { %2651 = dma.done.wait %s2110_s12, 128 }
 0x171   : > { %2652 = vsyncadd %s2110_s12, 4294967168  ;;  %s1810_s29 = scalar_lea.vmem [#allocation2], %s2474_s0  ;;  %s1812_s20 = scalar_lea.vmem [#allocation3], %s2474_s0  ;;  %vm1816_vm0 = vcmask 261120   ;;  %v1814_v37 = vld [vmem:[%s2815_s10] sm:$0xff]  ;;  %vm1832_vm1 = vcmask 7168  }
 0x172   : > { %v1811_v33 = vld [vmem:[%s1810_s29] sm:$0xff]  ;;  %s2692_s24 = smov 1   ;;  %s2693_s16 = smov 127  }
 0x173   : > { %v1813_v34 = vld [vmem:[%s1812_s20] sm:$0xff]  ;;  %s2478_s10 = sshll.u32 %s2675_s30, 7  ;;  %s1860_s25 = sshll.u32 %s2819_s19, 4  ;;  %s1861_s25 = int_to_ptr.vmem [resolvable:$true] %s1860_s25 }
 0x174   : > { %v1815_v35 = vmul.f32 %v1813_v34, %v1811_v33  ;;  %v1821_v52 = vld [vmem:[%s2819_s19] sm:$0xff]  ;;  %s1858_s7 = scalar_lea.hbm %s3042_s5, %s2478_s10  ;;  %s3056_s23 = sand.u32 1, %s2663_s27  }
 0x175   : > { %s1847_s18 = scalar_lea.sflag [#allocation9], %s3056_s23  ;;  %s2589_s26 = scalar_lea.vmem %s1861_s25, 128 }
 0x176   : > { %v1817_v36 = vsel %vm1816_vm0, %v1815_v35, 0.0  ;;  %p2590_p0 = scmp.ne.s32.totalorder %s1861_s25, %s2589_s26  ;;  %s2694_s22 = smov [#allocation8]  }
 0x177   : > { %1818 = vadd.xlane.f32.xlu0 %v1817_v36  ;;  %s2593_s6 = sshll.u32 %s2694_s22, 4  ;;  %s2594_s6 = int_to_ptr.vmem [resolvable:$false] %s2593_s6 }
 0x178   : > { %p2591_p1 = pnand %p2590_p0, %p2780_p13  ;;  %s2595_s30 = scalar_lea.vmem %s2594_s6, 256 }
 0x179   : > { %p2596_p3 = scmp.lt.s32.totalorder %s1861_s25, %s2594_s6  ;;  %p2597_p4 = scmp.lt.s32.totalorder %s2595_s30, %s2589_s26 }
 0x17a   : > { %p2592_p2 = pneg %p2591_p1 }
 0x17b   : > { %p2598_p6 = por %p2597_p4, %p2596_p3 }
 0x17d   : > { %p2599_p7 = pnand %p2598_p6, %p2592_p2 }
 0x200   : > { %v1819_v38 = vpop.xlane.xlu0 %1818 }
 0x201   : > { %v1820_v39 = vadd.f32 %v1819_v38, %v1814_v37 }
 0x203   : > { %1823 = vrot.lane.b32.xlu0 %v1820_v39, %s2692_s24 }
 0x275   : > { %v1824_v40 = vpop.permute.xlu0 %1823 }
 0x276   : > { %v1826_v41 = vmul.f32 %v1824_v40, %v1814_v37 }
 0x278   : > { %v1827_v42 = vmul.f32 %v1826_v41, %v1824_v40 }
 0x27a   : > { %1829 = vrot.lane.b32.xlu1 %v1827_v42, %s2693_s16 }
 0x2ec   : > { %v1830_v43 = vpop.permute.xlu1 %1829 }
 0x2ed   : > { %v1833_v44 = vsel %vm1832_vm1, %v1830_v43, 0.0 }
 0x2ee   : > { %1834 = vadd.xlane.f32.xlu1 %v1833_v44 }
 0x377   : > { %v1835_v45 = vpop.xlane.xlu1 %1834 }
 0x378   : > { %v1836_v46 = vrot.slane %v1835_v45, 4 }
 0x37a   : > { %v1837_v47 = vadd.f32 %v1836_v46, %v1835_v45 }
 0x37c   : > { %v1838_v48 = vrot.slane %v1837_v47, 2 }
 0x37e   : > { %v1839_v49 = vadd.f32 %v1838_v48, %v1837_v47 }
 0x380   : > { %v1840_v50 = vrot.slane %v1839_v49, 1 }
 0x382   : > { %v1841_v51 = vadd.f32 %v1840_v50, %v1839_v49 }
 0x384   : > { %2487 = vpush %v1841_v51 }
 0x3b5   : > { %s2488_s15 = spop %2487 }
 0x3b6   : > { %v1843_v53 = vstv %s2488_s15 }
 0x3b7   : > { %v1844_v54 = vadd.f32 %v1843_v53, %v1821_v52 }
 0x3b9   : > { %1845 = vst [vmem:[%s2819_s19] sm:$0xff] %v1844_v54 }
 0x3ba   : > { %2602 = shalt.err (!%p2599_p7)
}
 0x3bb   : > { %s2603_s0 = scalar_lea.hbm %s1858_s7, 128  ;;  %s2607_s11 = scalar_lea.hbm %s3042_s5, 256 }
 0x3bc   : > { %p2604_p8 = scmp.ne.s32.totalorder %s1858_s7, %s2603_s0  ;;  %p2608_p11 = scmp.lt.s32.totalorder %s1858_s7, %s3042_s5 }
 0x3bd   : > { %p2609_p12 = scmp.lt.s32.totalorder %s2607_s11, %s2603_s0 }
 0x3be   : > { %p2605_p9 = pnand %p2604_p8, %p2780_p13 }
 0x3bf   : > { %p2610_p0 = por %p2609_p12, %p2608_p11 }
 0x3c0   : > { %p2606_p10 = pneg %p2605_p9 }
 0x3c2   : > { %p2611_p1 = pnand %p2610_p0, %p2606_p10 }
 0x3c4   : > { %2614 = shalt.err (!%p2611_p1)
}
 0x3c5   : > { %2489 = dma.vmem_to_hbm [thread:$0]  (%p2780_p13), %s1861_s25, 128, %s1858_s7, %s1847_s18  }
 0x3c6 PF: > { %p2495_p2 = scmp.ge.s32.totalorder %s2687_s8, 2  ;;  %s1872_s20 = sand.u32 1, %s2659_s1  }
 0x3c7   : > { %s1873_s24 = scalar_lea.sflag [#allocation9], %s1872_s20 }
 0x3c8   : > { %p2492_p3 = pnand %p2495_p2, %p2790_p5 }
 0x3ca   : > { %p2493_p4 = pneg %p2492_p3 }
 0x3cc   : > { %2654 = dma.done.wait (%p2493_p4), %s1873_s24, 128  }
 0x3cd   : > { %2656 = vsyncadd (%p2493_p4), %s1873_s24, 4294967168  ;;  %s28_s8 = sadd.s32 1, %s2687_s8   ;;  %s3057_s29 = sld [smem:[#allocation46_spill]] }
 0x3ce   : > { %p25_p6 = scmp.ge.s32.totalorder %s28_s8, 6   ;;  %s3058_s30 = sld [smem:[#allocation47_spill]] }
 0x3cf   : > { %s3059_s6 = sld [smem:[#allocation48_spill]]  ;;  %s3061_s1 = smov %s2663_s27 }
 0x3d0   : > { %s3060_s7 = sld [smem:[#allocation49_spill]]  ;;  %s3062_s27 = smov %s2667_s28 }
 0x3d1   : > { %s3063_s28 = smov %s2798_s17  ;;  %27 = sbr.rel (!%p25_p6) target bundleno = 31 (0x1f), region = 1421 }
 0x3d6   :  { %1878 = vsyncpa [#allocation9], 1 }
 0x3d7   :  { %1880 = vsyncpa [#allocation9 + $0x1], 1 }
 0x3d8   :  { %1881 = vsyncmov [#allocation4] }
 0x3db   :  { %s1882_s13 = vpop.sfrf %1881 }
 0x3dc   :  { %p2481_p13 = scmp.ne.s32.totalorder %s1882_s13, 0 }
 0x3de   :  { %1886 = shalt.err (%p2481_p13)  }
 0x3df   :  { %1888 = vsyncmov [#allocation4 + $0x1] }
 0x3e2   :  { %s1889_s14 = vpop.sfrf %1888 }
 0x3e3   :  { %p2482_p5 = scmp.ne.s32.totalorder %s1889_s14, 0 }
 0x3e5   :  { %1893 = shalt.err (%p2482_p5)  }
 0x3e6   :  { %1895 = vsyncmov [#allocation4 + $0x2] }
 0x3e9   :  { %s1896_s17 = vpop.sfrf %1895 }
 0x3ea   :  { %p2483_p7 = scmp.ne.s32.totalorder %s1896_s17, 0 }
 0x3ec   :  { %1900 = shalt.err (%p2483_p7)  }
 0x3ed   :  { %1902 = vsyncmov [#allocation4 + $0x3] }
 0x3f0   :  { %s1903_s16 = vpop.sfrf %1902 }
 0x3f1   :  { %p2484_p8 = scmp.ne.s32.totalorder %s1903_s16, 0 }
 0x3f3   :  { %1907 = shalt.err (%p2484_p8)  }

</bundles_post_ra>
